<compile_context>
chip_gen: v7x
topology: tpu7x:2x2x1
jax: 0.10.0
libtpu: 0.0.40
codegen_flags: <defaults>
</compile_context>

<pallas_src>
import functools

import jax
import jax.numpy as jnp
from jax.experimental import pallas as pl
from jax.experimental.pallas import tpu as pltpu


def lstm_kernel(x_ref, wih0_ref, whh0_ref, b0_ref, w1s_ref, b1_ref,
                fcw_ref, fcb_ref, out_ref, *, hidden_dim, seq_len):
    """One batch-block of the LSTMModel forward (eval mode).

    x_ref   : (T*bb, D)  f32   rows ordered time-major, batch-minor
    wih0    : (D, 4H)    bf16  (weight_ih_l0.T)
    whh0    : (H, 4H)    bf16  (weight_hh_l0.T)
    b0      : (1, 4H)    f32   (bias_ih_l0 + bias_hh_l0)
    w1s     : (2H, 4H)   bf16  ([weight_ih_l1.T; weight_hh_l1.T] stacked along K)
    b1      : (1, 4H)    f32   (bias_ih_l1 + bias_hh_l1)
    fcw     : (H, O)     f32   (fc.weight.T)
    fcb     : (1, O)     f32
    out_ref : (bb, O)    f32
    """
    H = hidden_dim
    T = seq_len
    bb = x_ref.shape[0] // T

    wih0 = wih0_ref[...]
    whh0 = whh0_ref[...]
    w1s = w1s_ref[...]
    # Hoisted bias broadcast (JAX does not CSE broadcast_in_dim inside the loop).
    b1b = jnp.broadcast_to(b1_ref[...], (bb, 4 * H))

    # Hoisted layer-0 input projection for all T time steps: one big MXU matmul off the
    # serial recurrence path; b0 folded in with a single broadcast.
    xp = jnp.dot(x_ref[...].astype(jnp.bfloat16), wih0,
                 preferred_element_type=jnp.float32) + b0_ref[...]       # (T*bb, 4H) f32

    def gates_to_hc(g, c):
        # PyTorch gate order: i, f, g, o.  Nonlinearities evaluated once on the full
        # (bb, 4H) value (EUP processes whole vregs anyway), then lane-sliced.
        # TODO(synk): with H=32 the gate slices sit at lane offsets 0/32/64/96; if the
        # lowering shows XLU rolls on the hot path, re-lay out gates sublane-wise.
        sg = jax.nn.sigmoid(g)
        th = jnp.tanh(g)
        i = sg[:, 0 * H:1 * H]
        f = sg[:, 1 * H:2 * H]
        gg = th[:, 2 * H:3 * H]
        o = sg[:, 3 * H:4 * H]
        c_new = f * c + i * gg
        h_new = o * jnp.tanh(c_new)
        return h_new, c_new

    zeros = jnp.zeros((bb, H), jnp.float32)
    h1, c1, h2, c2 = zeros, zeros, zeros, zeros

    # T is small & static -> fully unroll so the scheduler can overlap step-t MXU
    # pushes with step-(t-1) gate VPU/EUP work.
    # TODO(synk): for long sequences switch to a time-chunk grid axis (streamed x
    # BlockSpec, "arbitrary") with h/c carried in VMEM scratch instead of unrolling.
    for t in range(T):
        # layer 0: input projection already hoisted -> only the recurrent matmul remains
        g0 = xp[t * bb:(t + 1) * bb, :] + jnp.dot(
            h1.astype(jnp.bfloat16), whh0, preferred_element_type=jnp.float32)
        h1, c1 = gates_to_hc(g0, c1)
        # TODO(synk): inter-layer dropout (p=0.2) is training-only; eval mode == identity.
        # layer 1: fused input+recurrent matmul on the concatenated [h1, h2] carries
        z = jnp.concatenate([h1, h2], axis=1).astype(jnp.bfloat16)       # (bb, 2H)
        g1 = jnp.dot(z, w1s, preferred_element_type=jnp.float32) + b1b
        h2, c2 = gates_to_hc(g1, c2)

    # hidden[-1] -> dropout(eval=identity) -> fc -> sigmoid (once per call, f32)
    logits = jnp.dot(h2, fcw_ref[...], preferred_element_type=jnp.float32) + fcb_ref[...]
    out_ref[...] = jax.nn.sigmoid(logits)


def lstm_model_forward(x, params, hidden_dim, output_dim):
    B, T, D = x.shape
    H = hidden_dim

    # Batch blocking: one grid step per block of bb sequences, marked "parallel" so
    # chips with 2 TensorCores (v7x) shard the batch. bb is the full batch when small,
    # otherwise a sublane-friendly multiple of 8 (batch padded, output sliced back).
    if B <= 8:
        bb, Bp = B, B
        x_f32 = x.astype(jnp.float32)
    else:
        bb = 8
        Bp = pl.cdiv(B, bb) * bb
        x_f32 = jnp.pad(x.astype(jnp.float32), ((0, Bp - B), (0, 0), (0, 0)))
    nb = Bp // bb

    # (B, T, D) -> (nb, T*bb, D): rows inside a block are time-major / batch-minor so the
    # hoisted per-step projection slice [t*bb:(t+1)*bb] is contiguous inside the kernel.
    x_blocks = (x_f32.reshape(nb, bb, T, D)
                     .transpose(0, 2, 1, 3)
                     .reshape(nb, T * bb, D))

    # bf16 weights for the recurrence matmuls (f32 accumulation in-kernel); biases and
    # the tiny FC stay f32.  Layer-1 weights stacked along K for the fused dot.
    wih0 = params["wih0"].astype(jnp.bfloat16)                           # (D, 4H)
    whh0 = params["whh0"].astype(jnp.bfloat16)                           # (H, 4H)
    w1s = jnp.concatenate([params["wih1"], params["whh1"]],
                          axis=0).astype(jnp.bfloat16)                   # (2H, 4H)
    b0, b1 = params["b0"], params["b1"]
    fc_w, fc_b = params["fc_w"], params["fc_b"]

    kern = functools.partial(lstm_kernel, hidden_dim=H, seq_len=T)

    def full(a):
        # whole-array block, constant block index -> resident in VMEM, fetched once
        return pl.BlockSpec(a.shape, lambda i: (0, 0))

    out = pl.pallas_call(
        kern,
        out_shape=jax.ShapeDtypeStruct((Bp, output_dim), jnp.float32),
        grid=(nb,),
        in_specs=[
            pl.BlockSpec((None, T * bb, D), lambda i: (i, 0, 0)),        # x batch-block
            full(wih0), full(whh0), full(b0),
            full(w1s), full(b1),
            full(fc_w), full(fc_b),
        ],
        out_specs=pl.BlockSpec((bb, output_dim), lambda i: (i, 0)),
        compiler_params=pltpu.CompilerParams(
            dimension_semantics=("parallel",)),
    )(x_blocks, wih0, whh0, b0, w1s, b1, fc_w, fc_b)
    return out[:B]


def init_params(key, input_dim, hidden_dim, output_dim):
    """Deterministic init matching PyTorch shapes (uniform(-1/sqrt(H), 1/sqrt(H)))."""
    H = hidden_dim
    bound = 1.0 / jnp.sqrt(jnp.float32(H))
    ks = jax.random.split(key, 12)

    def u(k, shape):
        return jax.random.uniform(k, shape, jnp.float32, -bound, bound)

    # layer 0: weight_ih (4H, D), weight_hh (4H, H), bias_ih (4H,), bias_hh (4H,)
    wih0 = u(ks[0], (4 * H, input_dim)).T          # -> (D, 4H)
    whh0 = u(ks[1], (4 * H, H)).T                  # -> (H, 4H)
    b0 = (u(ks[2], (4 * H,)) + u(ks[3], (4 * H,))).reshape(1, 4 * H)
    # layer 1: weight_ih (4H, H)
    wih1 = u(ks[4], (4 * H, H)).T                  # -> (H, 4H)
    whh1 = u(ks[5], (4 * H, H)).T                  # -> (H, 4H)
    b1 = (u(ks[6], (4 * H,)) + u(ks[7], (4 * H,))).reshape(1, 4 * H)
    # fc: weight (O, H), bias (O,)
    fc_w = u(ks[8], (output_dim, H)).T             # -> (H, O)
    fc_b = u(ks[9], (output_dim,)).reshape(1, output_dim)

    return dict(wih0=wih0, whh0=whh0, b0=b0,
                wih1=wih1, whh1=whh1, b1=b1,
                fc_w=fc_w, fc_b=fc_b)


def reference_forward(x, params, hidden_dim):
    """Pure-JAX f32 reference (eval-mode) for correctness checking."""
    H = hidden_dim
    B, T, _ = x.shape

    def cell(x_t, h, c, wih, whh, b):
        g = x_t @ wih + h @ whh + b
        i = jax.nn.sigmoid(g[:, 0 * H:1 * H])
        f = jax.nn.sigmoid(g[:, 1 * H:2 * H])
        gg = jnp.tanh(g[:, 2 * H:3 * H])
        o = jax.nn.sigmoid(g[:, 3 * H:4 * H])
        c = f * c + i * gg
        return o * jnp.tanh(c), c

    h1 = c1 = h2 = c2 = jnp.zeros((B, H), jnp.float32)
    for t in range(T):
        h1, c1 = cell(x[:, t, :], h1, c1, params["wih0"], params["whh0"], params["b0"])
        h2, c2 = cell(h1, h2, c2, params["wih1"], params["whh1"], params["b1"])
    return jax.nn.sigmoid(h2 @ params["fc_w"] + params["fc_b"])


if __name__ == "__main__":
    input_dim, hidden_dim, num_layers, output_dim = 16, 32, 2, 1
    batch, seq = 2, 8

    key = jax.random.PRNGKey(0)
    k_x, k_p = jax.random.split(key)
    x = jax.random.normal(k_x, (batch, seq, input_dim), jnp.float32)
    params = init_params(k_p, input_dim, hidden_dim, output_dim)

    out = lstm_model_forward(x, params, hidden_dim, output_dim)
    out = jax.block_until_ready(out)

    ref = reference_forward(x, params, hidden_dim)
    assert out.shape == (batch, output_dim)
    # bf16 matmul operands (f32 accumulation) -> loosened tolerance vs the f32 reference
    assert jnp.allclose(out, ref, atol=2e-2, rtol=2e-2), (out, ref)

    print("KERNEL_OK")
</pallas_src>

<mosaic_0001>
module attributes {stable_mosaic.version = 11 : i64} {
  func.func @lstm_kernel(%arg0: i32, %arg1: memref<1x16x16xf32, #tpu.memory_space<vmem>>, %arg2: memref<16x128xbf16, #tpu.memory_space<vmem>>, %arg3: memref<32x128xbf16, #tpu.memory_space<vmem>>, %arg4: memref<1x128xf32, #tpu.memory_space<vmem>>, %arg5: memref<64x128xbf16, #tpu.memory_space<vmem>>, %arg6: memref<1x128xf32, #tpu.memory_space<vmem>>, %arg7: memref<32x1xf32, #tpu.memory_space<vmem>>, %arg8: memref<1x1xf32, #tpu.memory_space<vmem>>, %arg9: memref<2x1xf32, #tpu.memory_space<vmem>>) attributes {dimension_semantics = [#tpu.dimension_semantics<parallel>], iteration_bounds = array<i64: 1>, scalar_prefetch = 0 : i64, scratch_operands = 0 : i64, tpu.core_type = #tpu.core_type<tc>, window_params = [{transform_indices = @transform_0, window_bounds = array<i64: 1, 16, 16>}, {pipeline_mode = #tpu.pipeline_mode<synchronous>, transform_indices = @transform_1, window_bounds = array<i64: 16, 128>}, {pipeline_mode = #tpu.pipeline_mode<synchronous>, transform_indices = @transform_2, window_bounds = array<i64: 32, 128>}, {pipeline_mode = #tpu.pipeline_mode<synchronous>, transform_indices = @transform_3, window_bounds = array<i64: 1, 128>}, {pipeline_mode = #tpu.pipeline_mode<synchronous>, transform_indices = @transform_4, window_bounds = array<i64: 64, 128>}, {pipeline_mode = #tpu.pipeline_mode<synchronous>, transform_indices = @transform_5, window_bounds = array<i64: 1, 128>}, {pipeline_mode = #tpu.pipeline_mode<synchronous>, transform_indices = @transform_6, window_bounds = array<i64: 32, 1>}, {pipeline_mode = #tpu.pipeline_mode<synchronous>, transform_indices = @transform_7, window_bounds = array<i64: 1, 1>}, {transform_indices = @transform_8, window_bounds = array<i64: 2, 1>}]} {
    %c0 = arith.constant 0 : index
    %c0_0 = arith.constant 0 : index
    %0 = vector.load %arg2[%c0, %c0_0] : memref<16x128xbf16, #tpu.memory_space<vmem>>, vector<16x128xbf16>
    %c0_1 = arith.constant 0 : index
    %c0_2 = arith.constant 0 : index
    %1 = vector.load %arg3[%c0_1, %c0_2] : memref<32x128xbf16, #tpu.memory_space<vmem>>, vector<32x128xbf16>
    %c0_3 = arith.constant 0 : index
    %c0_4 = arith.constant 0 : index
    %2 = vector.load %arg5[%c0_3, %c0_4] : memref<64x128xbf16, #tpu.memory_space<vmem>>, vector<64x128xbf16>
    %c0_5 = arith.constant 0 : index
    %c0_6 = arith.constant 0 : index
    %3 = vector.load %arg6[%c0_5, %c0_6] : memref<1x128xf32, #tpu.memory_space<vmem>>, vector<1x128xf32>
    %4 = vector.shape_cast %3 : vector<1x128xf32> to vector<1x128xf32>
    %5 = vector.broadcast %4 : vector<1x128xf32> to vector<2x128xf32>
    %c0_7 = arith.constant 0 : index
    %c0_8 = arith.constant 0 : index
    %c0_9 = arith.constant 0 : index
    %6 = vector.load %arg1[%c0_7, %c0_8, %c0_9] : memref<1x16x16xf32, #tpu.memory_space<vmem>>, vector<1x16x16xf32>
    %7 = vector.shape_cast %6 : vector<1x16x16xf32> to vector<16x16xf32>
    %8 = arith.truncf %7 : vector<16x16xf32> to vector<16x16xbf16>
    %cst = arith.constant dense<0.000000e+00> : vector<16x128xf32>
    %9 = tpu.matmul %8, %0, %cst {dimension_numbers = #tpu.dot_dimension_numbers<[1], [0], [0], [1], [0, 0, 1, 1], [], []>} : vector<16x16xbf16>, vector<16x128xbf16>, vector<16x128xf32> -> vector<16x128xf32>
    %c0_10 = arith.constant 0 : index
    %c0_11 = arith.constant 0 : index
    %10 = vector.load %arg4[%c0_10, %c0_11] : memref<1x128xf32, #tpu.memory_space<vmem>>, vector<1x128xf32>
    %11 = vector.broadcast %10 : vector<1x128xf32> to vector<16x128xf32>
    %12 = arith.addf %9, %11 : vector<16x128xf32>
    %cst_12 = arith.constant 0.000000e+00 : f32
    %13 = vector.broadcast %cst_12 : f32 to vector<2x32xf32>
    %14 = vector.extract_strided_slice %12 {offsets = [0, 0], sizes = [2, 128], strides = [1, 1]} : vector<16x128xf32> to vector<2x128xf32>
    %15 = arith.truncf %13 : vector<2x32xf32> to vector<2x32xbf16>
    %cst_13 = arith.constant dense<0.000000e+00> : vector<2x128xf32>
    %16 = tpu.matmul %15, %1, %cst_13 {dimension_numbers = #tpu.dot_dimension_numbers<[1], [0], [0], [1], [0, 0, 1, 1], [], []>} : vector<2x32xbf16>, vector<32x128xbf16>, vector<2x128xf32> -> vector<2x128xf32>
    %17 = arith.addf %14, %16 : vector<2x128xf32>
    %18 = arith.negf %17 : vector<2x128xf32>
    %19 = math.exp %18 : vector<2x128xf32>
    %cst_14 = arith.constant 1.000000e+00 : f32
    %20 = vector.broadcast %cst_14 : f32 to vector<2x128xf32>
    %21 = arith.addf %20, %19 : vector<2x128xf32>
    %22 = arith.divf %20, %21 : vector<2x128xf32>
    %23 = math.tanh %17 : vector<2x128xf32>
    %24 = vector.extract_strided_slice %22 {offsets = [0, 0], sizes = [2, 32], strides = [1, 1]} : vector<2x128xf32> to vector<2x32xf32>
    %25 = vector.extract_strided_slice %22 {offsets = [0, 32], sizes = [2, 32], strides = [1, 1]} : vector<2x128xf32> to vector<2x32xf32>
    %26 = vector.extract_strided_slice %23 {offsets = [0, 64], sizes = [2, 32], strides = [1, 1]} : vector<2x128xf32> to vector<2x32xf32>
    %27 = vector.extract_strided_slice %22 {offsets = [0, 96], sizes = [2, 32], strides = [1, 1]} : vector<2x128xf32> to vector<2x32xf32>
    %28 = arith.mulf %25, %13 : vector<2x32xf32>
    %29 = arith.mulf %24, %26 : vector<2x32xf32>
    %30 = arith.addf %28, %29 : vector<2x32xf32>
    %31 = math.tanh %30 : vector<2x32xf32>
    %32 = arith.mulf %27, %31 : vector<2x32xf32>
    %33 = tpu.concatenate %32, %13 in 1 : vector<2x32xf32>, vector<2x32xf32> -> vector<2x64xf32>
    %34 = arith.truncf %33 : vector<2x64xf32> to vector<2x64xbf16>
    %cst_15 = arith.constant dense<0.000000e+00> : vector<2x128xf32>
    %35 = tpu.matmul %34, %2, %cst_15 {dimension_numbers = #tpu.dot_dimension_numbers<[1], [0], [0], [1], [0, 0, 1, 1], [], []>} : vector<2x64xbf16>, vector<64x128xbf16>, vector<2x128xf32> -> vector<2x128xf32>
    %36 = arith.addf %35, %5 : vector<2x128xf32>
    %37 = arith.negf %36 : vector<2x128xf32>
    %38 = math.exp %37 : vector<2x128xf32>
    %cst_16 = arith.constant 1.000000e+00 : f32
    %39 = vector.broadcast %cst_16 : f32 to vector<2x128xf32>
    %40 = arith.addf %39, %38 : vector<2x128xf32>
    %41 = arith.divf %39, %40 : vector<2x128xf32>
    %42 = math.tanh %36 : vector<2x128xf32>
    %43 = vector.extract_strided_slice %41 {offsets = [0, 0], sizes = [2, 32], strides = [1, 1]} : vector<2x128xf32> to vector<2x32xf32>
    %44 = vector.extract_strided_slice %41 {offsets = [0, 32], sizes = [2, 32], strides = [1, 1]} : vector<2x128xf32> to vector<2x32xf32>
    %45 = vector.extract_strided_slice %42 {offsets = [0, 64], sizes = [2, 32], strides = [1, 1]} : vector<2x128xf32> to vector<2x32xf32>
    %46 = vector.extract_strided_slice %41 {offsets = [0, 96], sizes = [2, 32], strides = [1, 1]} : vector<2x128xf32> to vector<2x32xf32>
    %47 = arith.mulf %44, %13 : vector<2x32xf32>
    %48 = arith.mulf %43, %45 : vector<2x32xf32>
    %49 = arith.addf %47, %48 : vector<2x32xf32>
    %50 = math.tanh %49 : vector<2x32xf32>
    %51 = arith.mulf %46, %50 : vector<2x32xf32>
    %52 = vector.extract_strided_slice %12 {offsets = [2, 0], sizes = [2, 128], strides = [1, 1]} : vector<16x128xf32> to vector<2x128xf32>
    %53 = arith.truncf %32 : vector<2x32xf32> to vector<2x32xbf16>
    %cst_17 = arith.constant dense<0.000000e+00> : vector<2x128xf32>
    %54 = tpu.matmul %53, %1, %cst_17 {dimension_numbers = #tpu.dot_dimension_numbers<[1], [0], [0], [1], [0, 0, 1, 1], [], []>} : vector<2x32xbf16>, vector<32x128xbf16>, vector<2x128xf32> -> vector<2x128xf32>
    %55 = arith.addf %52, %54 : vector<2x128xf32>
    %56 = arith.negf %55 : vector<2x128xf32>
    %57 = math.exp %56 : vector<2x128xf32>
    %cst_18 = arith.constant 1.000000e+00 : f32
    %58 = vector.broadcast %cst_18 : f32 to vector<2x128xf32>
    %59 = arith.addf %58, %57 : vector<2x128xf32>
    %60 = arith.divf %58, %59 : vector<2x128xf32>
    %61 = math.tanh %55 : vector<2x128xf32>
    %62 = vector.extract_strided_slice %60 {offsets = [0, 0], sizes = [2, 32], strides = [1, 1]} : vector<2x128xf32> to vector<2x32xf32>
    %63 = vector.extract_strided_slice %60 {offsets = [0, 32], sizes = [2, 32], strides = [1, 1]} : vector<2x128xf32> to vector<2x32xf32>
    %64 = vector.extract_strided_slice %61 {offsets = [0, 64], sizes = [2, 32], strides = [1, 1]} : vector<2x128xf32> to vector<2x32xf32>
    %65 = vector.extract_strided_slice %60 {offsets = [0, 96], sizes = [2, 32], strides = [1, 1]} : vector<2x128xf32> to vector<2x32xf32>
    %66 = arith.mulf %63, %30 : vector<2x32xf32>
    %67 = arith.mulf %62, %64 : vector<2x32xf32>
    %68 = arith.addf %66, %67 : vector<2x32xf32>
    %69 = math.tanh %68 : vector<2x32xf32>
    %70 = arith.mulf %65, %69 : vector<2x32xf32>
    %71 = tpu.concatenate %70, %51 in 1 : vector<2x32xf32>, vector<2x32xf32> -> vector<2x64xf32>
    %72 = arith.truncf %71 : vector<2x64xf32> to vector<2x64xbf16>
    %cst_19 = arith.constant dense<0.000000e+00> : vector<2x128xf32>
    %73 = tpu.matmul %72, %2, %cst_19 {dimension_numbers = #tpu.dot_dimension_numbers<[1], [0], [0], [1], [0, 0, 1, 1], [], []>} : vector<2x64xbf16>, vector<64x128xbf16>, vector<2x128xf32> -> vector<2x128xf32>
    %74 = arith.addf %73, %5 : vector<2x128xf32>
    %75 = arith.negf %74 : vector<2x128xf32>
    %76 = math.exp %75 : vector<2x128xf32>
    %cst_20 = arith.constant 1.000000e+00 : f32
    %77 = vector.broadcast %cst_20 : f32 to vector<2x128xf32>
    %78 = arith.addf %77, %76 : vector<2x128xf32>
    %79 = arith.divf %77, %78 : vector<2x128xf32>
    %80 = math.tanh %74 : vector<2x128xf32>
    %81 = vector.extract_strided_slice %79 {offsets = [0, 0], sizes = [2, 32], strides = [1, 1]} : vector<2x128xf32> to vector<2x32xf32>
    %82 = vector.extract_strided_slice %79 {offsets = [0, 32], sizes = [2, 32], strides = [1, 1]} : vector<2x128xf32> to vector<2x32xf32>
    %83 = vector.extract_strided_slice %80 {offsets = [0, 64], sizes = [2, 32], strides = [1, 1]} : vector<2x128xf32> to vector<2x32xf32>
    %84 = vector.extract_strided_slice %79 {offsets = [0, 96], sizes = [2, 32], strides = [1, 1]} : vector<2x128xf32> to vector<2x32xf32>
    %85 = arith.mulf %82, %49 : vector<2x32xf32>
    %86 = arith.mulf %81, %83 : vector<2x32xf32>
    %87 = arith.addf %85, %86 : vector<2x32xf32>
    %88 = math.tanh %87 : vector<2x32xf32>
    %89 = arith.mulf %84, %88 : vector<2x32xf32>
    %90 = vector.extract_strided_slice %12 {offsets = [4, 0], sizes = [2, 128], strides = [1, 1]} : vector<16x128xf32> to vector<2x128xf32>
    %91 = arith.truncf %70 : vector<2x32xf32> to vector<2x32xbf16>
    %cst_21 = arith.constant dense<0.000000e+00> : vector<2x128xf32>
    %92 = tpu.matmul %91, %1, %cst_21 {dimension_numbers = #tpu.dot_dimension_numbers<[1], [0], [0], [1], [0, 0, 1, 1], [], []>} : vector<2x32xbf16>, vector<32x128xbf16>, vector<2x128xf32> -> vector<2x128xf32>
    %93 = arith.addf %90, %92 : vector<2x128xf32>
    %94 = arith.negf %93 : vector<2x128xf32>
    %95 = math.exp %94 : vector<2x128xf32>
    %cst_22 = arith.constant 1.000000e+00 : f32
    %96 = vector.broadcast %cst_22 : f32 to vector<2x128xf32>
    %97 = arith.addf %96, %95 : vector<2x128xf32>
    %98 = arith.divf %96, %97 : vector<2x128xf32>
    %99 = math.tanh %93 : vector<2x128xf32>
    %100 = vector.extract_strided_slice %98 {offsets = [0, 0], sizes = [2, 32], strides = [1, 1]} : vector<2x128xf32> to vector<2x32xf32>
    %101 = vector.extract_strided_slice %98 {offsets = [0, 32], sizes = [2, 32], strides = [1, 1]} : vector<2x128xf32> to vector<2x32xf32>
    %102 = vector.extract_strided_slice %99 {offsets = [0, 64], sizes = [2, 32], strides = [1, 1]} : vector<2x128xf32> to vector<2x32xf32>
    %103 = vector.extract_strided_slice %98 {offsets = [0, 96], sizes = [2, 32], strides = [1, 1]} : vector<2x128xf32> to vector<2x32xf32>
    %104 = arith.mulf %101, %68 : vector<2x32xf32>
    %105 = arith.mulf %100, %102 : vector<2x32xf32>
    %106 = arith.addf %104, %105 : vector<2x32xf32>
    %107 = math.tanh %106 : vector<2x32xf32>
    %108 = arith.mulf %103, %107 : vector<2x32xf32>
    %109 = tpu.concatenate %108, %89 in 1 : vector<2x32xf32>, vector<2x32xf32> -> vector<2x64xf32>
    %110 = arith.truncf %109 : vector<2x64xf32> to vector<2x64xbf16>
    %cst_23 = arith.constant dense<0.000000e+00> : vector<2x128xf32>
    %111 = tpu.matmul %110, %2, %cst_23 {dimension_numbers = #tpu.dot_dimension_numbers<[1], [0], [0], [1], [0, 0, 1, 1], [], []>} : vector<2x64xbf16>, vector<64x128xbf16>, vector<2x128xf32> -> vector<2x128xf32>
    %112 = arith.addf %111, %5 : vector<2x128xf32>
    %113 = arith.negf %112 : vector<2x128xf32>
    %114 = math.exp %113 : vector<2x128xf32>
    %cst_24 = arith.constant 1.000000e+00 : f32
    %115 = vector.broadcast %cst_24 : f32 to vector<2x128xf32>
    %116 = arith.addf %115, %114 : vector<2x128xf32>
    %117 = arith.divf %115, %116 : vector<2x128xf32>
    %118 = math.tanh %112 : vector<2x128xf32>
    %119 = vector.extract_strided_slice %117 {offsets = [0, 0], sizes = [2, 32], strides = [1, 1]} : vector<2x128xf32> to vector<2x32xf32>
    %120 = vector.extract_strided_slice %117 {offsets = [0, 32], sizes = [2, 32], strides = [1, 1]} : vector<2x128xf32> to vector<2x32xf32>
    %121 = vector.extract_strided_slice %118 {offsets = [0, 64], sizes = [2, 32], strides = [1, 1]} : vector<2x128xf32> to vector<2x32xf32>
    %122 = vector.extract_strided_slice %117 {offsets = [0, 96], sizes = [2, 32], strides = [1, 1]} : vector<2x128xf32> to vector<2x32xf32>
    %123 = arith.mulf %120, %87 : vector<2x32xf32>
    %124 = arith.mulf %119, %121 : vector<2x32xf32>
    %125 = arith.addf %123, %124 : vector<2x32xf32>
    %126 = math.tanh %125 : vector<2x32xf32>
    %127 = arith.mulf %122, %126 : vector<2x32xf32>
    %128 = vector.extract_strided_slice %12 {offsets = [6, 0], sizes = [2, 128], strides = [1, 1]} : vector<16x128xf32> to vector<2x128xf32>
    %129 = arith.truncf %108 : vector<2x32xf32> to vector<2x32xbf16>
    %cst_25 = arith.constant dense<0.000000e+00> : vector<2x128xf32>
    %130 = tpu.matmul %129, %1, %cst_25 {dimension_numbers = #tpu.dot_dimension_numbers<[1], [0], [0], [1], [0, 0, 1, 1], [], []>} : vector<2x32xbf16>, vector<32x128xbf16>, vector<2x128xf32> -> vector<2x128xf32>
    %131 = arith.addf %128, %130 : vector<2x128xf32>
    %132 = arith.negf %131 : vector<2x128xf32>
    %133 = math.exp %132 : vector<2x128xf32>
    %cst_26 = arith.constant 1.000000e+00 : f32
    %134 = vector.broadcast %cst_26 : f32 to vector<2x128xf32>
    %135 = arith.addf %134, %133 : vector<2x128xf32>
    %136 = arith.divf %134, %135 : vector<2x128xf32>
    %137 = math.tanh %131 : vector<2x128xf32>
    %138 = vector.extract_strided_slice %136 {offsets = [0, 0], sizes = [2, 32], strides = [1, 1]} : vector<2x128xf32> to vector<2x32xf32>
    %139 = vector.extract_strided_slice %136 {offsets = [0, 32], sizes = [2, 32], strides = [1, 1]} : vector<2x128xf32> to vector<2x32xf32>
    %140 = vector.extract_strided_slice %137 {offsets = [0, 64], sizes = [2, 32], strides = [1, 1]} : vector<2x128xf32> to vector<2x32xf32>
    %141 = vector.extract_strided_slice %136 {offsets = [0, 96], sizes = [2, 32], strides = [1, 1]} : vector<2x128xf32> to vector<2x32xf32>
    %142 = arith.mulf %139, %106 : vector<2x32xf32>
    %143 = arith.mulf %138, %140 : vector<2x32xf32>
    %144 = arith.addf %142, %143 : vector<2x32xf32>
    %145 = math.tanh %144 : vector<2x32xf32>
    %146 = arith.mulf %141, %145 : vector<2x32xf32>
    %147 = tpu.concatenate %146, %127 in 1 : vector<2x32xf32>, vector<2x32xf32> -> vector<2x64xf32>
    %148 = arith.truncf %147 : vector<2x64xf32> to vector<2x64xbf16>
    %cst_27 = arith.constant dense<0.000000e+00> : vector<2x128xf32>
    %149 = tpu.matmul %148, %2, %cst_27 {dimension_numbers = #tpu.dot_dimension_numbers<[1], [0], [0], [1], [0, 0, 1, 1], [], []>} : vector<2x64xbf16>, vector<64x128xbf16>, vector<2x128xf32> -> vector<2x128xf32>
    %150 = arith.addf %149, %5 : vector<2x128xf32>
    %151 = arith.negf %150 : vector<2x128xf32>
    %152 = math.exp %151 : vector<2x128xf32>
    %cst_28 = arith.constant 1.000000e+00 : f32
    %153 = vector.broadcast %cst_28 : f32 to vector<2x128xf32>
    %154 = arith.addf %153, %152 : vector<2x128xf32>
    %155 = arith.divf %153, %154 : vector<2x128xf32>
    %156 = math.tanh %150 : vector<2x128xf32>
    %157 = vector.extract_strided_slice %155 {offsets = [0, 0], sizes = [2, 32], strides = [1, 1]} : vector<2x128xf32> to vector<2x32xf32>
    %158 = vector.extract_strided_slice %155 {offsets = [0, 32], sizes = [2, 32], strides = [1, 1]} : vector<2x128xf32> to vector<2x32xf32>
    %159 = vector.extract_strided_slice %156 {offsets = [0, 64], sizes = [2, 32], strides = [1, 1]} : vector<2x128xf32> to vector<2x32xf32>
    %160 = vector.extract_strided_slice %155 {offsets = [0, 96], sizes = [2, 32], strides = [1, 1]} : vector<2x128xf32> to vector<2x32xf32>
    %161 = arith.mulf %158, %125 : vector<2x32xf32>
    %162 = arith.mulf %157, %159 : vector<2x32xf32>
    %163 = arith.addf %161, %162 : vector<2x32xf32>
    %164 = math.tanh %163 : vector<2x32xf32>
    %165 = arith.mulf %160, %164 : vector<2x32xf32>
    %166 = vector.extract_strided_slice %12 {offsets = [8, 0], sizes = [2, 128], strides = [1, 1]} : vector<16x128xf32> to vector<2x128xf32>
    %167 = arith.truncf %146 : vector<2x32xf32> to vector<2x32xbf16>
    %cst_29 = arith.constant dense<0.000000e+00> : vector<2x128xf32>
    %168 = tpu.matmul %167, %1, %cst_29 {dimension_numbers = #tpu.dot_dimension_numbers<[1], [0], [0], [1], [0, 0, 1, 1], [], []>} : vector<2x32xbf16>, vector<32x128xbf16>, vector<2x128xf32> -> vector<2x128xf32>
    %169 = arith.addf %166, %168 : vector<2x128xf32>
    %170 = arith.negf %169 : vector<2x128xf32>
    %171 = math.exp %170 : vector<2x128xf32>
    %cst_30 = arith.constant 1.000000e+00 : f32
    %172 = vector.broadcast %cst_30 : f32 to vector<2x128xf32>
    %173 = arith.addf %172, %171 : vector<2x128xf32>
    %174 = arith.divf %172, %173 : vector<2x128xf32>
    %175 = math.tanh %169 : vector<2x128xf32>
    %176 = vector.extract_strided_slice %174 {offsets = [0, 0], sizes = [2, 32], strides = [1, 1]} : vector<2x128xf32> to vector<2x32xf32>
    %177 = vector.extract_strided_slice %174 {offsets = [0, 32], sizes = [2, 32], strides = [1, 1]} : vector<2x128xf32> to vector<2x32xf32>
    %178 = vector.extract_strided_slice %175 {offsets = [0, 64], sizes = [2, 32], strides = [1, 1]} : vector<2x128xf32> to vector<2x32xf32>
    %179 = vector.extract_strided_slice %174 {offsets = [0, 96], sizes = [2, 32], strides = [1, 1]} : vector<2x128xf32> to vector<2x32xf32>
    %180 = arith.mulf %177, %144 : vector<2x32xf32>
    %181 = arith.mulf %176, %178 : vector<2x32xf32>
    %182 = arith.addf %180, %181 : vector<2x32xf32>
    %183 = math.tanh %182 : vector<2x32xf32>
    %184 = arith.mulf %179, %183 : vector<2x32xf32>
    %185 = tpu.concatenate %184, %165 in 1 : vector<2x32xf32>, vector<2x32xf32> -> vector<2x64xf32>
    %186 = arith.truncf %185 : vector<2x64xf32> to vector<2x64xbf16>
    %cst_31 = arith.constant dense<0.000000e+00> : vector<2x128xf32>
    %187 = tpu.matmul %186, %2, %cst_31 {dimension_numbers = #tpu.dot_dimension_numbers<[1], [0], [0], [1], [0, 0, 1, 1], [], []>} : vector<2x64xbf16>, vector<64x128xbf16>, vector<2x128xf32> -> vector<2x128xf32>
    %188 = arith.addf %187, %5 : vector<2x128xf32>
    %189 = arith.negf %188 : vector<2x128xf32>
    %190 = math.exp %189 : vector<2x128xf32>
    %cst_32 = arith.constant 1.000000e+00 : f32
    %191 = vector.broadcast %cst_32 : f32 to vector<2x128xf32>
    %192 = arith.addf %191, %190 : vector<2x128xf32>
    %193 = arith.divf %191, %192 : vector<2x128xf32>
    %194 = math.tanh %188 : vector<2x128xf32>
    %195 = vector.extract_strided_slice %193 {offsets = [0, 0], sizes = [2, 32], strides = [1, 1]} : vector<2x128xf32> to vector<2x32xf32>
    %196 = vector.extract_strided_slice %193 {offsets = [0, 32], sizes = [2, 32], strides = [1, 1]} : vector<2x128xf32> to vector<2x32xf32>
    %197 = vector.extract_strided_slice %194 {offsets = [0, 64], sizes = [2, 32], strides = [1, 1]} : vector<2x128xf32> to vector<2x32xf32>
    %198 = vector.extract_strided_slice %193 {offsets = [0, 96], sizes = [2, 32], strides = [1, 1]} : vector<2x128xf32> to vector<2x32xf32>
    %199 = arith.mulf %196, %163 : vector<2x32xf32>
    %200 = arith.mulf %195, %197 : vector<2x32xf32>
    %201 = arith.addf %199, %200 : vector<2x32xf32>
    %202 = math.tanh %201 : vector<2x32xf32>
    %203 = arith.mulf %198, %202 : vector<2x32xf32>
    %204 = vector.extract_strided_slice %12 {offsets = [10, 0], sizes = [2, 128], strides = [1, 1]} : vector<16x128xf32> to vector<2x128xf32>
    %205 = arith.truncf %184 : vector<2x32xf32> to vector<2x32xbf16>
    %cst_33 = arith.constant dense<0.000000e+00> : vector<2x128xf32>
    %206 = tpu.matmul %205, %1, %cst_33 {dimension_numbers = #tpu.dot_dimension_numbers<[1], [0], [0], [1], [0, 0, 1, 1], [], []>} : vector<2x32xbf16>, vector<32x128xbf16>, vector<2x128xf32> -> vector<2x128xf32>
    %207 = arith.addf %204, %206 : vector<2x128xf32>
    %208 = arith.negf %207 : vector<2x128xf32>
    %209 = math.exp %208 : vector<2x128xf32>
    %cst_34 = arith.constant 1.000000e+00 : f32
    %210 = vector.broadcast %cst_34 : f32 to vector<2x128xf32>
    %211 = arith.addf %210, %209 : vector<2x128xf32>
    %212 = arith.divf %210, %211 : vector<2x128xf32>
    %213 = math.tanh %207 : vector<2x128xf32>
    %214 = vector.extract_strided_slice %212 {offsets = [0, 0], sizes = [2, 32], strides = [1, 1]} : vector<2x128xf32> to vector<2x32xf32>
    %215 = vector.extract_strided_slice %212 {offsets = [0, 32], sizes = [2, 32], strides = [1, 1]} : vector<2x128xf32> to vector<2x32xf32>
    %216 = vector.extract_strided_slice %213 {offsets = [0, 64], sizes = [2, 32], strides = [1, 1]} : vector<2x128xf32> to vector<2x32xf32>
    %217 = vector.extract_strided_slice %212 {offsets = [0, 96], sizes = [2, 32], strides = [1, 1]} : vector<2x128xf32> to vector<2x32xf32>
    %218 = arith.mulf %215, %182 : vector<2x32xf32>
    %219 = arith.mulf %214, %216 : vector<2x32xf32>
    %220 = arith.addf %218, %219 : vector<2x32xf32>
    %221 = math.tanh %220 : vector<2x32xf32>
    %222 = arith.mulf %217, %221 : vector<2x32xf32>
    %223 = tpu.concatenate %222, %203 in 1 : vector<2x32xf32>, vector<2x32xf32> -> vector<2x64xf32>
    %224 = arith.truncf %223 : vector<2x64xf32> to vector<2x64xbf16>
    %cst_35 = arith.constant dense<0.000000e+00> : vector<2x128xf32>
    %225 = tpu.matmul %224, %2, %cst_35 {dimension_numbers = #tpu.dot_dimension_numbers<[1], [0], [0], [1], [0, 0, 1, 1], [], []>} : vector<2x64xbf16>, vector<64x128xbf16>, vector<2x128xf32> -> vector<2x128xf32>
    %226 = arith.addf %225, %5 : vector<2x128xf32>
    %227 = arith.negf %226 : vector<2x128xf32>
    %228 = math.exp %227 : vector<2x128xf32>
    %cst_36 = arith.constant 1.000000e+00 : f32
    %229 = vector.broadcast %cst_36 : f32 to vector<2x128xf32>
    %230 = arith.addf %229, %228 : vector<2x128xf32>
    %231 = arith.divf %229, %230 : vector<2x128xf32>
    %232 = math.tanh %226 : vector<2x128xf32>
    %233 = vector.extract_strided_slice %231 {offsets = [0, 0], sizes = [2, 32], strides = [1, 1]} : vector<2x128xf32> to vector<2x32xf32>
    %234 = vector.extract_strided_slice %231 {offsets = [0, 32], sizes = [2, 32], strides = [1, 1]} : vector<2x128xf32> to vector<2x32xf32>
    %235 = vector.extract_strided_slice %232 {offsets = [0, 64], sizes = [2, 32], strides = [1, 1]} : vector<2x128xf32> to vector<2x32xf32>
    %236 = vector.extract_strided_slice %231 {offsets = [0, 96], sizes = [2, 32], strides = [1, 1]} : vector<2x128xf32> to vector<2x32xf32>
    %237 = arith.mulf %234, %201 : vector<2x32xf32>
    %238 = arith.mulf %233, %235 : vector<2x32xf32>
    %239 = arith.addf %237, %238 : vector<2x32xf32>
    %240 = math.tanh %239 : vector<2x32xf32>
    %241 = arith.mulf %236, %240 : vector<2x32xf32>
    %242 = vector.extract_strided_slice %12 {offsets = [12, 0], sizes = [2, 128], strides = [1, 1]} : vector<16x128xf32> to vector<2x128xf32>
    %243 = arith.truncf %222 : vector<2x32xf32> to vector<2x32xbf16>
    %cst_37 = arith.constant dense<0.000000e+00> : vector<2x128xf32>
    %244 = tpu.matmul %243, %1, %cst_37 {dimension_numbers = #tpu.dot_dimension_numbers<[1], [0], [0], [1], [0, 0, 1, 1], [], []>} : vector<2x32xbf16>, vector<32x128xbf16>, vector<2x128xf32> -> vector<2x128xf32>
    %245 = arith.addf %242, %244 : vector<2x128xf32>
    %246 = arith.negf %245 : vector<2x128xf32>
    %247 = math.exp %246 : vector<2x128xf32>
    %cst_38 = arith.constant 1.000000e+00 : f32
    %248 = vector.broadcast %cst_38 : f32 to vector<2x128xf32>
    %249 = arith.addf %248, %247 : vector<2x128xf32>
    %250 = arith.divf %248, %249 : vector<2x128xf32>
    %251 = math.tanh %245 : vector<2x128xf32>
    %252 = vector.extract_strided_slice %250 {offsets = [0, 0], sizes = [2, 32], strides = [1, 1]} : vector<2x128xf32> to vector<2x32xf32>
    %253 = vector.extract_strided_slice %250 {offsets = [0, 32], sizes = [2, 32], strides = [1, 1]} : vector<2x128xf32> to vector<2x32xf32>
    %254 = vector.extract_strided_slice %251 {offsets = [0, 64], sizes = [2, 32], strides = [1, 1]} : vector<2x128xf32> to vector<2x32xf32>
    %255 = vector.extract_strided_slice %250 {offsets = [0, 96], sizes = [2, 32], strides = [1, 1]} : vector<2x128xf32> to vector<2x32xf32>
    %256 = arith.mulf %253, %220 : vector<2x32xf32>
    %257 = arith.mulf %252, %254 : vector<2x32xf32>
    %258 = arith.addf %256, %257 : vector<2x32xf32>
    %259 = math.tanh %258 : vector<2x32xf32>
    %260 = arith.mulf %255, %259 : vector<2x32xf32>
    %261 = tpu.concatenate %260, %241 in 1 : vector<2x32xf32>, vector<2x32xf32> -> vector<2x64xf32>
    %262 = arith.truncf %261 : vector<2x64xf32> to vector<2x64xbf16>
    %cst_39 = arith.constant dense<0.000000e+00> : vector<2x128xf32>
    %263 = tpu.matmul %262, %2, %cst_39 {dimension_numbers = #tpu.dot_dimension_numbers<[1], [0], [0], [1], [0, 0, 1, 1], [], []>} : vector<2x64xbf16>, vector<64x128xbf16>, vector<2x128xf32> -> vector<2x128xf32>
    %264 = arith.addf %263, %5 : vector<2x128xf32>
    %265 = arith.negf %264 : vector<2x128xf32>
    %266 = math.exp %265 : vector<2x128xf32>
    %cst_40 = arith.constant 1.000000e+00 : f32
    %267 = vector.broadcast %cst_40 : f32 to vector<2x128xf32>
    %268 = arith.addf %267, %266 : vector<2x128xf32>
    %269 = arith.divf %267, %268 : vector<2x128xf32>
    %270 = math.tanh %264 : vector<2x128xf32>
    %271 = vector.extract_strided_slice %269 {offsets = [0, 0], sizes = [2, 32], strides = [1, 1]} : vector<2x128xf32> to vector<2x32xf32>
    %272 = vector.extract_strided_slice %269 {offsets = [0, 32], sizes = [2, 32], strides = [1, 1]} : vector<2x128xf32> to vector<2x32xf32>
    %273 = vector.extract_strided_slice %270 {offsets = [0, 64], sizes = [2, 32], strides = [1, 1]} : vector<2x128xf32> to vector<2x32xf32>
    %274 = vector.extract_strided_slice %269 {offsets = [0, 96], sizes = [2, 32], strides = [1, 1]} : vector<2x128xf32> to vector<2x32xf32>
    %275 = arith.mulf %272, %239 : vector<2x32xf32>
    %276 = arith.mulf %271, %273 : vector<2x32xf32>
    %277 = arith.addf %275, %276 : vector<2x32xf32>
    %278 = math.tanh %277 : vector<2x32xf32>
    %279 = arith.mulf %274, %278 : vector<2x32xf32>
    %280 = vector.extract_strided_slice %12 {offsets = [14, 0], sizes = [2, 128], strides = [1, 1]} : vector<16x128xf32> to vector<2x128xf32>
    %281 = arith.truncf %260 : vector<2x32xf32> to vector<2x32xbf16>
    %cst_41 = arith.constant dense<0.000000e+00> : vector<2x128xf32>
    %282 = tpu.matmul %281, %1, %cst_41 {dimension_numbers = #tpu.dot_dimension_numbers<[1], [0], [0], [1], [0, 0, 1, 1], [], []>} : vector<2x32xbf16>, vector<32x128xbf16>, vector<2x128xf32> -> vector<2x128xf32>
    %283 = arith.addf %280, %282 : vector<2x128xf32>
    %284 = arith.negf %283 : vector<2x128xf32>
    %285 = math.exp %284 : vector<2x128xf32>
    %cst_42 = arith.constant 1.000000e+00 : f32
    %286 = vector.broadcast %cst_42 : f32 to vector<2x128xf32>
    %287 = arith.addf %286, %285 : vector<2x128xf32>
    %288 = arith.divf %286, %287 : vector<2x128xf32>
    %289 = math.tanh %283 : vector<2x128xf32>
    %290 = vector.extract_strided_slice %288 {offsets = [0, 0], sizes = [2, 32], strides = [1, 1]} : vector<2x128xf32> to vector<2x32xf32>
    %291 = vector.extract_strided_slice %288 {offsets = [0, 32], sizes = [2, 32], strides = [1, 1]} : vector<2x128xf32> to vector<2x32xf32>
    %292 = vector.extract_strided_slice %289 {offsets = [0, 64], sizes = [2, 32], strides = [1, 1]} : vector<2x128xf32> to vector<2x32xf32>
    %293 = vector.extract_strided_slice %288 {offsets = [0, 96], sizes = [2, 32], strides = [1, 1]} : vector<2x128xf32> to vector<2x32xf32>
    %294 = arith.mulf %291, %258 : vector<2x32xf32>
    %295 = arith.mulf %290, %292 : vector<2x32xf32>
    %296 = arith.addf %294, %295 : vector<2x32xf32>
    %297 = math.tanh %296 : vector<2x32xf32>
    %298 = arith.mulf %293, %297 : vector<2x32xf32>
    %299 = tpu.concatenate %298, %279 in 1 : vector<2x32xf32>, vector<2x32xf32> -> vector<2x64xf32>
    %300 = arith.truncf %299 : vector<2x64xf32> to vector<2x64xbf16>
    %cst_43 = arith.constant dense<0.000000e+00> : vector<2x128xf32>
    %301 = tpu.matmul %300, %2, %cst_43 {dimension_numbers = #tpu.dot_dimension_numbers<[1], [0], [0], [1], [0, 0, 1, 1], [], []>} : vector<2x64xbf16>, vector<64x128xbf16>, vector<2x128xf32> -> vector<2x128xf32>
    %302 = arith.addf %301, %5 : vector<2x128xf32>
    %303 = arith.negf %302 : vector<2x128xf32>
    %304 = math.exp %303 : vector<2x128xf32>
    %cst_44 = arith.constant 1.000000e+00 : f32
    %305 = vector.broadcast %cst_44 : f32 to vector<2x128xf32>
    %306 = arith.addf %305, %304 : vector<2x128xf32>
    %307 = arith.divf %305, %306 : vector<2x128xf32>
    %308 = math.tanh %302 : vector<2x128xf32>
    %309 = vector.extract_strided_slice %307 {offsets = [0, 0], sizes = [2, 32], strides = [1, 1]} : vector<2x128xf32> to vector<2x32xf32>
    %310 = vector.extract_strided_slice %307 {offsets = [0, 32], sizes = [2, 32], strides = [1, 1]} : vector<2x128xf32> to vector<2x32xf32>
    %311 = vector.extract_strided_slice %308 {offsets = [0, 64], sizes = [2, 32], strides = [1, 1]} : vector<2x128xf32> to vector<2x32xf32>
    %312 = vector.extract_strided_slice %307 {offsets = [0, 96], sizes = [2, 32], strides = [1, 1]} : vector<2x128xf32> to vector<2x32xf32>
    %313 = arith.mulf %310, %277 : vector<2x32xf32>
    %314 = arith.mulf %309, %311 : vector<2x32xf32>
    %315 = arith.addf %313, %314 : vector<2x32xf32>
    %316 = math.tanh %315 : vector<2x32xf32>
    %317 = arith.mulf %312, %316 : vector<2x32xf32>
    %c0_45 = arith.constant 0 : index
    %c0_46 = arith.constant 0 : index
    %318 = vector.load %arg7[%c0_45, %c0_46] : memref<32x1xf32, #tpu.memory_space<vmem>>, vector<32x1xf32>
    %cst_47 = arith.constant dense<0.000000e+00> : vector<2x1xf32>
    %319 = tpu.matmul %317, %318, %cst_47 {dimension_numbers = #tpu.dot_dimension_numbers<[1], [0], [0], [1], [0, 0, 1, 1], [], []>} : vector<2x32xf32>, vector<32x1xf32>, vector<2x1xf32> -> vector<2x1xf32>
    %c0_48 = arith.constant 0 : index
    %c0_49 = arith.constant 0 : index
    %320 = vector.load %arg8[%c0_48, %c0_49] : memref<1x1xf32, #tpu.memory_space<vmem>>, vector<1x1xf32>
    %321 = vector.broadcast %320 : vector<1x1xf32> to vector<2x1xf32>
    %322 = arith.addf %319, %321 : vector<2x1xf32>
    %323 = arith.negf %322 : vector<2x1xf32>
    %324 = math.exp %323 : vector<2x1xf32>
    %cst_50 = arith.constant 1.000000e+00 : f32
    %325 = vector.broadcast %cst_50 : f32 to vector<2x1xf32>
    %326 = arith.addf %325, %324 : vector<2x1xf32>
    %327 = arith.divf %325, %326 : vector<2x1xf32>
    %c0_51 = arith.constant 0 : index
    %c0_52 = arith.constant 0 : index
    %328 = vector.load %arg9[%c0_51, %c0_52] : memref<2x1xf32, #tpu.memory_space<vmem>>, vector<2x1xf32>
    tpu.vector_store %arg9[%c0_51, %c0_52], %327 {strides = array<i32>} : memref<2x1xf32, #tpu.memory_space<vmem>>, vector<2x1xf32>,
    return
  }
  func.func @transform_0(%arg0: i32) -> (i32, i32, i32) {
    %c0_i32 = arith.constant 0 : i32
    %c0_i32_0 = arith.constant 0 : i32
    %c0_i32_1 = arith.constant 0 : i32
    return %arg0, %c0_i32, %c0_i32_0 : i32, i32, i32
  }
  func.func @transform_1(%arg0: i32) -> (i32, i32) {
    %c0_i32 = arith.constant 0 : i32
    %c0_i32_0 = arith.constant 0 : i32
    %c0_i32_1 = arith.constant 0 : i32
    return %c0_i32, %c0_i32_0 : i32, i32
  }
  func.func @transform_2(%arg0: i32) -> (i32, i32) {
    %c0_i32 = arith.constant 0 : i32
    %c0_i32_0 = arith.constant 0 : i32
    %c0_i32_1 = arith.constant 0 : i32
    return %c0_i32, %c0_i32_0 : i32, i32
  }
  func.func @transform_3(%arg0: i32) -> (i32, i32) {
    %c0_i32 = arith.constant 0 : i32
    %c0_i32_0 = arith.constant 0 : i32
    %c0_i32_1 = arith.constant 0 : i32
    return %c0_i32, %c0_i32_0 : i32, i32
  }
  func.func @transform_4(%arg0: i32) -> (i32, i32) {
    %c0_i32 = arith.constant 0 : i32
    %c0_i32_0 = arith.constant 0 : i32
    %c0_i32_1 = arith.constant 0 : i32
    return %c0_i32, %c0_i32_0 : i32, i32
  }
  func.func @transform_5(%arg0: i32) -> (i32, i32) {
    %c0_i32 = arith.constant 0 : i32
    %c0_i32_0 = arith.constant 0 : i32
    %c0_i32_1 = arith.constant 0 : i32
    return %c0_i32, %c0_i32_0 : i32, i32
  }
  func.func @transform_6(%arg0: i32) -> (i32, i32) {
    %c0_i32 = arith.constant 0 : i32
    %c0_i32_0 = arith.constant 0 : i32
    %c0_i32_1 = arith.constant 0 : i32
    return %c0_i32, %c0_i32_0 : i32, i32
  }
  func.func @transform_7(%arg0: i32) -> (i32, i32) {
    %c0_i32 = arith.constant 0 : i32
    %c0_i32_0 = arith.constant 0 : i32
    %c0_i32_1 = arith.constant 0 : i32
    return %c0_i32, %c0_i32_0 : i32, i32
  }
  func.func @transform_8(%arg0: i32) -> (i32, i32) {
    %c0_i32 = arith.constant 0 : i32
    %c0_i32_0 = arith.constant 0 : i32
    return %arg0, %c0_i32 : i32, i32
  }
}

</mosaic_0001>

<bundles_post_ra>
// kernel: tpu_custom_call.1
= control target key start
LH: loop header
LB: loop body
LE: loop exit
PB: predicated region body
PF: predicated region fallthrough
CT: control target
= control target key end

     0   :  { %s2461_s0 = inlined_call_operand.vmem [shape: f32[1,16,16], index: 0, kind: input, shape index: {}]   ;;  %s2462_s1 = inlined_call_operand.hbm [shape: bf16[16,128], index: 1, kind: input, shape index: {}]   ;;  %s2463_s2 = inlined_call_operand.hbm [shape: bf16[32,128], index: 2, kind: input, shape index: {}]   ;;  %s2464_s3 = inlined_call_operand.vmem [shape: f32[1,128], index: 3, kind: input, shape index: {}]   ;;  %s2465_s4 = inlined_call_operand.vmem [shape: bf16[64,128], index: 4, kind: input, shape index: {}]   ;;  %s2466_s5 = inlined_call_operand.vmem [shape: f32[1,128], index: 5, kind: input, shape index: {}]   ;;  %s2467_s6 = inlined_call_operand.vmem [shape: f32[32,1], index: 6, kind: input, shape index: {}]   ;;  %s2468_s7 = inlined_call_operand.<no memory space> [shape: f32[1,1], index: 7, kind: input, shape index: {}]   ;;  %s2469_s8 = inlined_call_operand.vmem [shape: f32[2,1], index: 8, kind: output, shape index: {}]  }
   0x1   :  { %v13_v0 = vstv %s2468_s7 }
   0x2   :  { %14 = vst [vmem:[#allocation2] sm:$0x1] %v13_v0 }
   0x3   :  { %15 = vsyncpa [#allocation4], 0 }
   0x4   :  { %16 = vsyncpa [#allocation6], 0  ;;  %s2021_s29 = smov [#allocation3]   ;;  %s1973_s11 = scalar_lea.hbm %s2462_s1, 128 }
   0x5   :  { %s24_s30 = sshll.u32 %s2021_s29, 4  ;;  %p1974_p0 = scmp.ne.s32.totalorder %s2462_s1, %s1973_s11  ;;  %s25_s30 = int_to_ptr.vmem [resolvable:$true] %s24_s30 }
   0x6   :  { %p1977_p1 = scmp.lt.u32.totalorder %s1973_s11, %s2462_s1 }
   0x8   :  { %p1979_p2 = pnand %p1977_p1, %p1974_p0 }
   0xa   :  { %1982 = shalt.err (!%p1979_p2)
}
   0xb   :  { %s1983_s7 = scalar_lea.vmem %s25_s30, 128  ;;  %p1988_p4 = scmp.lt.s32.totalorder %s25_s30, %s25_s30 }
   0xc   :  { %p1984_p3 = scmp.ne.s32.totalorder %s25_s30, %s1983_s7  ;;  %p1989_p5 = scmp.lt.s32.totalorder %s1983_s7, %s1983_s7 }
   0xe   :  { %p1990_p6 = por %p1989_p5, %p1988_p4 }
  0x10   :  { %p1991_p7 = pnand %p1990_p6, %p1984_p3 }
  0x12   :  { %1994 = shalt.err (!%p1991_p7)
}
  0x13   :  { %s2022_s16 = smov 64   ;;  %s2023_s17 = smov 4  }
  0x14   :  { %30 = dma.hbm_to_vmem [thread:$0]  %s2462_s1, 128, %s25_s30, [#allocation4], %s2022_s16, %s2022_s16, %s2023_s17  }
  0x15   :  { %s2024_s20 = smov [#allocation5]   ;;  %s1995_s24 = scalar_lea.hbm %s2463_s2, 256 }
  0x16   :  { %s36_s21 = sshll.u32 %s2024_s20, 4  ;;  %p1996_p8 = scmp.ne.s32.totalorder %s2463_s2, %s1995_s24  ;;  %s37_s21 = int_to_ptr.vmem [resolvable:$true] %s36_s21 }
  0x17   :  { %p1999_p9 = scmp.lt.u32.totalorder %s1995_s24, %s2463_s2 }
  0x19   :  { %p2001_p10 = pnand %p1999_p9, %p1996_p8 }
  0x1b   :  { %2004 = shalt.err (!%p2001_p10)
}
  0x1c   :  { %s2005_s29 = scalar_lea.vmem %s37_s21, 256  ;;  %p2010_p12 = scmp.lt.s32.totalorder %s37_s21, %s37_s21 }
  0x1d   :  { %p2006_p11 = scmp.ne.s32.totalorder %s37_s21, %s2005_s29  ;;  %p2011_p13 = scmp.lt.s32.totalorder %s2005_s29, %s2005_s29 }
  0x1f   :  { %p2012_p0 = por %p2011_p13, %p2010_p12 }
  0x21   :  { %p2013_p1 = pnand %p2012_p0, %p2006_p11 }
  0x23   :  { %2016 = shalt.err (!%p2013_p1)
}
  0x24   :  { %42 = dma.hbm_to_vmem [thread:$0]  %s2463_s2, 256, %s37_s21, [#allocation6], %s2022_s16, %s2022_s16, %s2023_s17  }
  0x25   :  { %2017 = dma.done.wait [#allocation4], 128  }
  0x26   :  { %2018 = vsyncadd [#allocation4], 4294967168 }
  0x27   :  { %2019 = dma.done.wait [#allocation6], 256  }
  0x28   :  { %2020 = vsyncadd [#allocation6], 4294967040  ;;  %v2025_v1 = vmov 0.0   ;;  %vm2026_vm0 = vmmov 0   ;;  %v1833_v2 = vld [vmem:[#allocation3] sm:$0xff]   ;;  %v2112_v3 = vld [vmem:[#allocation5] sm:$0xff]  }
  0x29   :  { %1641 = vmatprep.subr.bf16.mxu0 %v2025_v1  ;;  %1647 = vmatprep.subr.bf16.mxu1 %v2025_v1  ;;  %v81_v4 = vld [vmem:[%s2461_s0] sm:$0xff]  ;;  %v82_v5 = vld [vmem:[%s2461_s0 + $0x8] sm:$0xff]  ;;  %vm97_vm1 = vcmask 130048   ;;  %v2121_v7 = vld [vmem:[#allocation5 + $0x8] sm:$0xff]   ;;  %v2027_v8 = vmov 0   ;;  %vm154_vm2 = vcmask 261120  }
  0x2a   :  { %1643 = vmatprep.mubr.msk.bf16.mxu0 %vm2026_vm0, %v2025_v1  ;;  %1651 = vmatprep.mubr.msk.bf16.mxu1 %vm2026_vm0, %v2025_v1  ;;  %v83_v6 = vpack.c.bf16 %v82_v5, %v81_v4  ;;  %v1527_v9 = vld [vmem:[%s2464_s3] ss:$0 sm:$0xff]  ;;  %s2028_s3 = smov 32   ;;  %v2157_v32 = vld [vmem:[%s2465_s4 + $0x8] sm:$0xff]   ;;  %v2164_v33 = vld [vmem:[%s2465_s4 + $0x10] sm:$0xff]   ;;  %vm253_vm3 = vcmask 523264  }
  0x2b   :  { %1642 = vmatpush3.bf16.msra.mxu0 %v1833_v2  ;;  %1648 = vmatpush3.bf16.msra.mxu1 %v2112_v3  ;;  %v2151_v31 = vld [vmem:[%s2465_s4] sm:$0xff]   ;;  %v2173_v35 = vld [vmem:[%s2465_s4 + $0x18] sm:$0xff]   ;;  %vm1518_vm4 = vcmask 1024  }
  0x2c   :  { %1655 = vmatprep.subr.bf16.mxu0 %v2025_v1  ;;  %1649 = vmatprep.subr.bf16.mxu1 %v2025_v1  ;;  %v2201_v43 = vld [vmem:[%s2466_s5] ss:$0 sm:$0xff] }
  0x2e   :  { %1644 = vmatmul.mubr.msk.bf16.vlgmr.msra.gmra.mrb[0].mxu0 %vm97_vm1, %v83_v6 }
  0x2f   :  { %1663 = vmatprep.mubr.msk.bf16.mxu0 %vm2026_vm0, %v2025_v1  ;;  %1650 = vmatpush3.bf16.msra.mxu1 %v2121_v7 }
  0x30   :  { %1667 = vmatprep.subr.bf16.mxu1 %v2025_v1  ;;  %1656 = vmatpush3.bf16.msra.mxu0 %v2151_v31 }
  0x31   :  { %1657 = vmatprep.subr.bf16.mxu0 %v2025_v1 }
  0x32   :  { %1652 = vmatmul.mubr.bf16.vlgmr.msra.gmra.mrb[0].mxu1 %v2027_v8 }
  0x33   :  { %1668 = vmatpush3.bf16.msra.mxu1 %v2112_v3  ;;  %1671 = vmatprep.mubr.msk.bf16.mxu1 %vm2026_vm0, %v2025_v1 }
  0x34   :  { %1669 = vmatprep.subr.bf16.mxu1 %v2025_v1  ;;  %1658 = vmatpush3.bf16.msra.mxu0 %v2157_v32 }
  0x35   :  { %1659 = vmatprep.subr.bf16.mxu0 %v2025_v1 }
  0x37   :  { %1670 = vmatpush3.bf16.msra.mxu1 %v2121_v7 }
  0x38   :  { %1675 = vmatprep.subr.bf16.mxu1 %v2025_v1  ;;  %1660 = vmatpush3.bf16.msra.mxu0 %v2164_v33 }
  0x39   :  { %1661 = vmatprep.subr.bf16.mxu0 %v2025_v1 }
  0x3c   :  { %1662 = vmatpush3.bf16.msra.mxu0 %v2173_v35 }
  0x3d   :  { %1687 = vmatprep.subr.bf16.mxu0 %v2025_v1 }
 0x101   :  { %v135_v10 = vpop.f32.mrb[0].mxu0 }
 0x102   :  { %v1645_v11 = vpop.f32.mrb[1].mxu0  ;;  %v2138_v12 = vadd.f32 %v1527_v9, %v135_v10 }
 0x103   :  { %v138_v13 = vpop.f32.mrb[2].mxu0 }
 0x104   :  { %v2140_v14 = vadd.f32 %v1527_v9, %v138_v13  ;;  %v1646_v15 = vpop.f32.mrb[3].mxu0 }
 0x105   :  { %v192_v16 = vpop.f32.mrb[0].mxu1 }
 0x106   :  { %v198_v17 = vadd.f32 %v192_v16, %v2138_v12  ;;  %v1653_v18 = vpop.f32.mrb[1].mxu1 }
 0x107   :  { %v195_v19 = vpop.f32.mrb[2].mxu1 }
 0x108   :  { %v1654_v20 = vpop.f32.mrb[3].mxu1  ;;  %1840 = vtanh.f32 %v198_v17  ;;  %v1532_v22 = vmul.f32 -1.442695, %v198_v17 }
 0x10a   :  { %1842 = vpow2.f32 %v1532_v22 }
 0x112   :  { %v1841_v21 = vpop.eup %1840 }
 0x113   :  { %208 = vrot.lane.b32.xlu0 %v1841_v21, %s2022_s16 }
 0x114   :  { %v1843_v23 = vpop.eup %1842 }
 0x115   :  { %v202_v24 = vadd.f32 1.0, %v1843_v23 }
 0x117   :  { %1844 = vrcp.f32 %v202_v24 }
 0x121   :  { %v1845_v25 = vpop.eup %1844 }
 0x122   :  { %v206_v28 = vmul.f32 0.0, %v1845_v25 }
 0x185   :  { %v209_v26 = vpop.permute.xlu0 %208 }
 0x186   :  { %v211_v27 = vmul.f32 %v1845_v25, %v209_v26 }
 0x188   :  { %213 = vrot.lane.b32.xlu0 %v211_v27, %s2028_s3 }
 0x1fa   :  { %v214_v29 = vpop.permute.xlu0 %213 }
 0x1fb   :  { %v2145_v30 = vadd.f32 %v214_v29, %v206_v28 }
 0x1fd   :  { %1846 = vtanh.f32 %v2145_v30  ;;  %v380_v8 = vrot.slane %v2145_v30, 6 }
 0x207   :  { %v1847_v34 = vpop.eup %1846 }
 0x208   :  { %219 = vrot.lane.b32.xlu1 %v1847_v34, %s2022_s16 }
 0x27a   :  { %v220_v36 = vpop.permute.xlu1 %219 }
 0x27b   :  { %v222_v37 = vmul.f32 %v1845_v25, %v220_v36 }
 0x27d   :  { %v321_v38 = vpack.c.bf16 %v222_v37, %v222_v37  ;;  %224 = vrot.lane.b32.xlu1 %v222_v37, %s2028_s3 }
 0x27f   :  { %323 = vrot.lane.b32.xlu0 %v321_v38, %s2028_s3 }
 0x2ef   :  { %v225_v39 = vpop.permute.xlu1 %224 }
 0x2f0   :  { %v227_v40 = vsel %vm154_vm2, %v225_v39, 0.0 }
 0x2f1   :  { %v228_v41 = vpack.c.bf16 %v227_v40, %v227_v40  ;;  %v324_v42 = vpop.permute.xlu0 %323 }
 0x2f2   :  { %1672 = vmatmul.mubr.msk.bf16.vlgmr.msra.gmra.mrb[4].mxu1 %vm154_vm2, %v324_v42 }
 0x2f3   :  { %1664 = vmatmul.mubr.msk.bf16.vlgmr.msra.gmra.mrb[4].mxu0 %vm253_vm3, %v228_v41  ;;  %1676 = vmatpush3.bf16.msra.mxu1 %v2151_v31 }
 0x2f4   :  { %1677 = vmatprep.subr.bf16.mxu1 %v2025_v1  ;;  %1688 = vmatpush3.bf16.msra.mxu0 %v2112_v3 }
 0x2f5   :  { %1689 = vmatprep.subr.bf16.mxu0 %v2025_v1  ;;  %1691 = vmatprep.mubr.msk.bf16.mxu0 %vm2026_vm0, %v2025_v1 }
 0x2f6   :  { %1683 = vmatprep.mubr.msk.bf16.mxu1 %vm2026_vm0, %v2025_v1 }
 0x2f7   :  { %1678 = vmatpush3.bf16.msra.mxu1 %v2157_v32 }
 0x2f8   :  { %1679 = vmatprep.subr.bf16.mxu1 %v2025_v1  ;;  %1690 = vmatpush3.bf16.msra.mxu0 %v2121_v7 }
 0x2f9   :  { %1695 = vmatprep.subr.bf16.mxu0 %v2025_v1 }
 0x2fb   :  { %1680 = vmatpush3.bf16.msra.mxu1 %v2164_v33 }
 0x2fc   :  { %1681 = vmatprep.subr.bf16.mxu1 %v2025_v1 }
 0x2ff   :  { %1682 = vmatpush3.bf16.msra.mxu1 %v2173_v35 }
 0x300   :  { %1707 = vmatprep.subr.bf16.mxu1 %v2025_v1 }
 0x3c5   :  { %v362_v44 = vpop.f32.mrb[4].mxu1 }
 0x3c6   :  { %v369_v45 = vrot.slane %v362_v44, 6  ;;  %v291_v46 = vpop.f32.mrb[4].mxu0  ;;  %v1673_v47 = vpop.f32.mrb[5].mxu1 }
 0x3c7   :  { %v292_v48 = vadd.f32 %v2201_v43, %v291_v46  ;;  %v1665_v49 = vpop.f32.mrb[5].mxu0  ;;  %v365_v50 = vpop.f32.mrb[6].mxu1 }
 0x3c8   :  { %v371_v51 = vadd.f32 %v369_v45, %v2138_v12  ;;  %v294_v52 = vpop.f32.mrb[6].mxu0  ;;  %v1674_v53 = vpop.f32.mrb[7].mxu1 }
 0x3c9   :  { %1848 = vtanh.f32 %v292_v48  ;;  %v1666_v54 = vpop.f32.mrb[7].mxu0  ;;  %v1538_v57 = vmul.f32 -1.442695, %v292_v48 }
 0x3ca   :  { %1850 = vtanh.f32 %v371_v51  ;;  %v1540_v58 = vmul.f32 -1.442695, %v371_v51 }
 0x3cb   :  { %1852 = vpow2.f32 %v1538_v57 }
 0x3cc   :  { %1854 = vpow2.f32 %v1540_v58 }
 0x3d3   :  { %v1849_v55 = vpop.eup %1848 }
 0x3d4   :  { %v1851_v56 = vpop.eup %1850  ;;  %306 = vrot.lane.b32.xlu1 %v1849_v55, %s2022_s16 }
 0x3d5   :  { %384 = vrot.lane.b32.xlu0 %v1851_v56, %s2022_s16  ;;  %v1853_v59 = vpop.eup %1852 }
 0x3d6   :  { %v1855_v60 = vpop.eup %1854  ;;  %v300_v61 = vadd.f32 1.0, %v1853_v59 }
 0x3d7   :  { %v375_v62 = vadd.f32 1.0, %v1855_v60 }
 0x3d8   :  { %1856 = vrcp.f32 %v300_v61 }
 0x3d9   :  { %1858 = vrcp.f32 %v375_v62 }
 0x3e2   :  { %v1857_v63 = vpop.eup %1856 }
 0x3e3   :  { %v1859_v2 = vpop.eup %1858  ;;  %v304_v9 = vmul.f32 0.0, %v1857_v63 }
 0x3e4   :  { %v382_v11 = vmul.f32 %v1859_v2, %v380_v8 }
 0x446   :  { %v307_v0 = vpop.permute.xlu1 %306 }
 0x447   :  { %v309_v4 = vmul.f32 %v1857_v63, %v307_v0  ;;  %v385_v5 = vpop.permute.xlu0 %384 }
 0x448   :  { %v387_v6 = vmul.f32 %v1859_v2, %v385_v5 }
 0x449   :  { %311 = vrot.lane.b32.xlu1 %v309_v4, %s2028_s3 }
 0x44a   :  { %389 = vrot.lane.b32.xlu0 %v387_v6, %s2028_s3 }
 0x4bb   :  { %v312_v10 = vpop.permute.xlu1 %311 }
 0x4bc   :  { %v2210_v13 = vadd.f32 %v312_v10, %v304_v9  ;;  %v390_v15 = vpop.permute.xlu0 %389 }
 0x4bd   :  { %v2212_v16 = vadd.f32 %v390_v15, %v382_v11 }
 0x4be   :  { %1860 = vtanh.f32 %v2210_v13 }
 0x4bf   :  { %1862 = vtanh.f32 %v2212_v16  ;;  %v539_v62 = vrot.slane %v2212_v16, 6 }
 0x4c8   :  { %v1861_v17 = vpop.eup %1860 }
 0x4c9   :  { %v1863_v18 = vpop.eup %1862  ;;  %317 = vrot.lane.b32.xlu1 %v1861_v17, %s2022_s16 }
 0x4ca   :  { %395 = vrot.lane.b32.xlu0 %v1863_v18, %s2022_s16 }
 0x53b   :  { %v318_v19 = vpop.permute.xlu1 %317 }
 0x53c   :  { %v320_v20 = vmul.f32 %v1857_v63, %v318_v19  ;;  %v396_v21 = vpop.permute.xlu0 %395 }
 0x53d   :  { %v398_v22 = vmul.f32 %v1859_v2, %v396_v21 }
 0x53e   :  { %v404_v23 = vrot.slane %v320_v20, 6 }
 0x53f   :  { %v479_v24 = vpack.c.bf16 %v398_v22, %v398_v22  ;;  %400 = vrot.lane.b32.xlu1 %v398_v22, %s2028_s3 }
 0x540   :  { %405 = vrot.lane.b32.xlu0 %v404_v23, %s2022_s16 }
 0x541   :  { %v481_v25 = vrot.slane %v479_v24, 1 }
 0x543   :  { %482 = vrot.lane.b32.xlu1 %v481_v25, %s2028_s3 }
 0x5b1   :  { %v401_v26 = vpop.permute.xlu1 %400 }
 0x5b2   :  { %v406_v27 = vpop.permute.xlu0 %405 }
 0x5b3   :  { %v408_v28 = vsel %vm154_vm2, %v401_v26, %v406_v27 }
 0x5b4   :  { %v409_v29 = vpack.c.bf16 %v408_v28, %v408_v28 }
 0x5b5   :  { %v483_v30 = vpop.permute.xlu1 %482 }
 0x5b6   :  { %v411_v34 = vrot.slane %v409_v29, 1  ;;  %1692 = vmatmul.mubr.msk.bf16.vlgmr.msra.gmra.mrb[8].mxu0 %vm154_vm2, %v483_v30 }
 0x5b7   :  { %1696 = vmatpush3.bf16.msra.mxu0 %v2151_v31  ;;  %1703 = vmatprep.mubr.msk.bf16.mxu0 %vm2026_vm0, %v2025_v1 }
 0x5b8   :  { %1684 = vmatmul.mubr.msk.bf16.vlgmr.msra.gmra.mrb[8].mxu1 %vm253_vm3, %v411_v34  ;;  %1697 = vmatprep.subr.bf16.mxu0 %v2025_v1 }
 0x5b9   :  { %1708 = vmatpush3.bf16.msra.mxu1 %v2112_v3  ;;  %1711 = vmatprep.mubr.msk.bf16.mxu1 %vm2026_vm0, %v2025_v1 }
 0x5ba   :  { %1709 = vmatprep.subr.bf16.mxu1 %v2025_v1 }
 0x5bb   :  { %1698 = vmatpush3.bf16.msra.mxu0 %v2157_v32 }
 0x5bc   :  { %1699 = vmatprep.subr.bf16.mxu0 %v2025_v1 }
 0x5bd   :  { %1710 = vmatpush3.bf16.msra.mxu1 %v2121_v7 }
 0x5be   :  { %1715 = vmatprep.subr.bf16.mxu1 %v2025_v1 }
 0x5bf   :  { %1700 = vmatpush3.bf16.msra.mxu0 %v2164_v33 }
 0x5c0   :  { %1701 = vmatprep.subr.bf16.mxu0 %v2025_v1 }
 0x5c3   :  { %1702 = vmatpush3.bf16.msra.mxu0 %v2173_v35 }
 0x5c4   :  { %1727 = vmatprep.subr.bf16.mxu0 %v2025_v1 }
 0x689   :  { %v521_v36 = vpop.f32.mrb[8].mxu0 }
 0x68a   :  { %v528_v37 = vrot.slane %v521_v36, 4  ;;  %v1693_v38 = vpop.f32.mrb[9].mxu0 }
 0x68b   :  { %v449_v39 = vpop.f32.mrb[8].mxu1  ;;  %v524_v40 = vpop.f32.mrb[10].mxu0 }
 0x68c   :  { %v530_v41 = vadd.f32 %v528_v37, %v2138_v12  ;;  %v450_v42 = vadd.f32 %v2201_v43, %v449_v39  ;;  %v1685_v44 = vpop.f32.mrb[9].mxu1  ;;  %v1694_v45 = vpop.f32.mrb[11].mxu0 }
 0x68d   :  { %v452_v46 = vpop.f32.mrb[10].mxu1 }
 0x68e   :  { %1864 = vtanh.f32 %v530_v41  ;;  %v1686_v47 = vpop.f32.mrb[11].mxu1  ;;  %v1544_v50 = vmul.f32 -1.442695, %v530_v41  ;;  %v1542_v51 = vmul.f32 -1.442695, %v450_v42 }
 0x68f   :  { %1866 = vtanh.f32 %v450_v42 }
 0x690   :  { %1868 = vpow2.f32 %v1544_v50 }
 0x691   :  { %1870 = vpow2.f32 %v1542_v51 }
 0x698   :  { %v1865_v48 = vpop.eup %1864 }
 0x699   :  { %v1867_v49 = vpop.eup %1866  ;;  %543 = vrot.lane.b32.xlu1 %v1865_v48, %s2022_s16 }
 0x69a   :  { %464 = vrot.lane.b32.xlu0 %v1867_v49, %s2022_s16  ;;  %v1869_v52 = vpop.eup %1868 }
 0x69b   :  { %v1871_v53 = vpop.eup %1870  ;;  %v534_v54 = vadd.f32 1.0, %v1869_v52 }
 0x69c   :  { %v458_v55 = vadd.f32 1.0, %v1871_v53 }
 0x69d   :  { %1872 = vrcp.f32 %v534_v54 }
 0x69e   :  { %1874 = vrcp.f32 %v458_v55 }
 0x6a7   :  { %v1873_v56 = vpop.eup %1872 }
 0x6a8   :  { %v1875_v58 = vpop.eup %1874  ;;  %v541_v63 = vmul.f32 %v1873_v56, %v539_v62 }
 0x6a9   :  { %v462_v0 = vmul.f32 %v1875_v58, %v2210_v13 }
 0x70b   :  { %v544_v57 = vpop.permute.xlu1 %543 }
 0x70c   :  { %v465_v59 = vpop.permute.xlu0 %464  ;;  %v546_v60 = vmul.f32 %v1873_v56, %v544_v57 }
 0x70d   :  { %v467_v61 = vmul.f32 %v1875_v58, %v465_v59 }
 0x70e   :  { %548 = vrot.lane.b32.xlu1 %v546_v60, %s2028_s3 }
 0x70f   :  { %469 = vrot.lane.b32.xlu0 %v467_v61, %s2028_s3 }
 0x780   :  { %v549_v2 = vpop.permute.xlu1 %548 }
 0x781   :  { %v470_v4 = vpop.permute.xlu0 %469  ;;  %v2248_v5 = vadd.f32 %v549_v2, %v541_v63 }
 0x782   :  { %v2250_v6 = vadd.f32 %v470_v4, %v462_v0 }
 0x783   :  { %1876 = vtanh.f32 %v2248_v5  ;;  %v698_v54 = vrot.slane %v2248_v5, 6 }
 0x784   :  { %1878 = vtanh.f32 %v2250_v6 }
 0x78d   :  { %v1877_v8 = vpop.eup %1876 }
 0x78e   :  { %v1879_v9 = vpop.eup %1878  ;;  %554 = vrot.lane.b32.xlu1 %v1877_v8, %s2022_s16 }
 0x78f   :  { %475 = vrot.lane.b32.xlu0 %v1879_v9, %s2022_s16 }
 0x800   :  { %v555_v10 = vpop.permute.xlu1 %554 }
 0x801   :  { %v476_v11 = vpop.permute.xlu0 %475  ;;  %v557_v15 = vmul.f32 %v1873_v56, %v555_v10 }
 0x802   :  { %v478_v13 = vmul.f32 %v1875_v58, %v476_v11 }
 0x803   :  { %v638_v16 = vpack.c.bf16 %v557_v15, %v557_v15  ;;  %559 = vrot.lane.b32.xlu0 %v557_v15, %s2028_s3 }
 0x804   :  { %v563_v17 = vrot.slane %v478_v13, 4 }
 0x805   :  { %v640_v18 = vrot.slane %v638_v16, 2 }
 0x806   :  { %564 = vrot.lane.b32.xlu1 %v563_v17, %s2022_s16 }
 0x807   :  { %641 = vrot.lane.b32.xlu0 %v640_v18, %s2028_s3 }
 0x875   :  { %v560_v19 = vpop.permute.xlu0 %559 }
 0x878   :  { %v565_v20 = vpop.permute.xlu1 %564 }
 0x879   :  { %v567_v21 = vsel %vm154_vm2, %v560_v19, %v565_v20  ;;  %v642_v22 = vpop.permute.xlu0 %641 }
 0x87a   :  { %v568_v23 = vpack.c.bf16 %v567_v21, %v567_v21  ;;  %1712 = vmatmul.mubr.msk.bf16.vlgmr.msra.gmra.mrb[12].mxu1 %vm154_vm2, %v642_v22 }
 0x87b   :  { %1716 = vmatpush3.bf16.msra.mxu1 %v2151_v31  ;;  %1723 = vmatprep.mubr.msk.bf16.mxu1 %vm2026_vm0, %v2025_v1 }
 0x87c   :  { %v570_v24 = vrot.slane %v568_v23, 2  ;;  %1717 = vmatprep.subr.bf16.mxu1 %v2025_v1 }
 0x87e   :  { %1704 = vmatmul.mubr.msk.bf16.vlgmr.msra.gmra.mrb[12].mxu0 %vm253_vm3, %v570_v24 }
 0x87f   :  { %1718 = vmatpush3.bf16.msra.mxu1 %v2157_v32  ;;  %1728 = vmatpush3.bf16.msra.mxu0 %v2112_v3 }
 0x880   :  { %1719 = vmatprep.subr.bf16.mxu1 %v2025_v1  ;;  %1729 = vmatprep.subr.bf16.mxu0 %v2025_v1 }
 0x881   :  { %1731 = vmatprep.mubr.msk.bf16.mxu0 %vm2026_vm0, %v2025_v1 }
 0x883   :  { %1720 = vmatpush3.bf16.msra.mxu1 %v2164_v33  ;;  %1730 = vmatpush3.bf16.msra.mxu0 %v2121_v7 }
 0x884   :  { %1721 = vmatprep.subr.bf16.mxu1 %v2025_v1  ;;  %1735 = vmatprep.subr.bf16.mxu0 %v2025_v1 }
 0x887   :  { %1722 = vmatpush3.bf16.msra.mxu1 %v2173_v35 }
 0x888   :  { %1747 = vmatprep.subr.bf16.mxu1 %v2025_v1 }
 0x94d   :  { %v680_v25 = vpop.f32.mrb[12].mxu1 }
 0x94e   :  { %v687_v26 = vrot.slane %v680_v25, 2  ;;  %v1713_v27 = vpop.f32.mrb[13].mxu1 }
 0x94f   :  { %v683_v28 = vpop.f32.mrb[14].mxu1 }
 0x950   :  { %v689_v29 = vadd.f32 %v687_v26, %v2138_v12  ;;  %v1714_v30 = vpop.f32.mrb[15].mxu1 }
 0x951   :  { %v608_v34 = vpop.f32.mrb[12].mxu0 }
 0x952   :  { %1880 = vtanh.f32 %v689_v29  ;;  %v609_v36 = vadd.f32 %v2201_v43, %v608_v34  ;;  %v1705_v37 = vpop.f32.mrb[13].mxu0  ;;  %v1548_v42 = vmul.f32 -1.442695, %v689_v29 }
 0x953   :  { %v611_v38 = vpop.f32.mrb[14].mxu0 }
 0x954   :  { %v1706_v39 = vpop.f32.mrb[15].mxu0  ;;  %1882 = vtanh.f32 %v609_v36  ;;  %v1546_v44 = vmul.f32 -1.442695, %v609_v36 }
 0x955   :  { %1884 = vpow2.f32 %v1548_v42 }
 0x956   :  { %1886 = vpow2.f32 %v1546_v44 }
 0x95c   :  { %v1881_v40 = vpop.eup %1880 }
 0x95d   :  { %702 = vrot.lane.b32.xlu0 %v1881_v40, %s2022_s16 }
 0x95e   :  { %v1883_v41 = vpop.eup %1882 }
 0x95f   :  { %623 = vrot.lane.b32.xlu1 %v1883_v41, %s2022_s16  ;;  %v1885_v12 = vpop.eup %1884 }
 0x960   :  { %v1887_v45 = vpop.eup %1886  ;;  %v693_v46 = vadd.f32 1.0, %v1885_v12 }
 0x961   :  { %v617_v47 = vadd.f32 1.0, %v1887_v45 }
 0x962   :  { %1888 = vrcp.f32 %v693_v46 }
 0x963   :  { %1890 = vrcp.f32 %v617_v47 }
 0x96c   :  { %v1889_v48 = vpop.eup %1888 }
 0x96d   :  { %v1891_v51 = vpop.eup %1890  ;;  %v700_v55 = vmul.f32 %v1889_v48, %v698_v54 }
 0x96e   :  { %v621_v58 = vmul.f32 %v1891_v51, %v2250_v6 }
 0x9cf   :  { %v703_v49 = vpop.permute.xlu0 %702 }
 0x9d0   :  { %v705_v50 = vmul.f32 %v1889_v48, %v703_v49 }
 0x9d1   :  { %v624_v52 = vpop.permute.xlu1 %623 }
 0x9d2   :  { %707 = vrot.lane.b32.xlu0 %v705_v50, %s2028_s3  ;;  %v626_v53 = vmul.f32 %v1891_v51, %v624_v52 }
 0x9d4   :  { %628 = vrot.lane.b32.xlu1 %v626_v53, %s2028_s3 }
 0xa44   :  { %v708_v56 = vpop.permute.xlu0 %707 }
 0xa45   :  { %v2285_v57 = vadd.f32 %v708_v56, %v700_v55 }
 0xa46   :  { %v629_v59 = vpop.permute.xlu1 %628 }
 0xa47   :  { %1892 = vtanh.f32 %v2285_v57  ;;  %v2289_v60 = vadd.f32 %v629_v59, %v621_v58  ;;  %v854_v45 = vrot.slane %v2285_v57, 6 }
 0xa49   :  { %1894 = vtanh.f32 %v2289_v60 }
 0xa51   :  { %v1893_v61 = vpop.eup %1892 }
 0xa52   :  { %713 = vrot.lane.b32.xlu0 %v1893_v61, %s2022_s16 }
 0xa53   :  { %v1895_v62 = vpop.eup %1894 }
 0xa54   :  { %634 = vrot.lane.b32.xlu1 %v1895_v62, %s2022_s16 }
 0xac4   :  { %v714_v63 = vpop.permute.xlu0 %713 }
 0xac5   :  { %v716_v0 = vmul.f32 %v1889_v48, %v714_v63 }
 0xac6   :  { %v635_v4 = vpop.permute.xlu1 %634 }
 0xac7   :  { %v797_v2 = vpack.c.bf16 %v716_v0, %v716_v0  ;;  %718 = vrot.lane.b32.xlu1 %v716_v0, %s2028_s3  ;;  %v637_v5 = vmul.f32 %v1891_v51, %v635_v4 }
 0xac9   :  { %v799_v6 = vrot.slane %v797_v2, 3  ;;  %v722_v8 = vrot.slane %v637_v5, 2 }
 0xacb   :  { %800 = vrot.lane.b32.xlu1 %v799_v6, %s2028_s3  ;;  %723 = vrot.lane.b32.xlu0 %v722_v8, %s2022_s16 }
 0xb39   :  { %v719_v9 = vpop.permute.xlu1 %718 }
 0xb3d   :  { %v801_v10 = vpop.permute.xlu1 %800  ;;  %v724_v11 = vpop.permute.xlu0 %723 }
 0xb3e   :  { %1732 = vmatmul.mubr.msk.bf16.vlgmr.msra.gmra.mrb[16].mxu0 %vm154_vm2, %v801_v10  ;;  %v726_v15 = vsel %vm154_vm2, %v719_v9, %v724_v11 }
 0xb3f   :  { %1736 = vmatpush3.bf16.msra.mxu0 %v2151_v31  ;;  %1743 = vmatprep.mubr.msk.bf16.mxu0 %vm2026_vm0, %v2025_v1  ;;  %v727_v13 = vpack.c.bf16 %v726_v15, %v726_v15 }
 0xb40   :  { %1737 = vmatprep.subr.bf16.mxu0 %v2025_v1 }
 0xb41   :  { %v729_v16 = vrot.slane %v727_v13, 3 }
 0xb43   :  { %1738 = vmatpush3.bf16.msra.mxu0 %v2157_v32  ;;  %1724 = vmatmul.mubr.msk.bf16.vlgmr.msra.gmra.mrb[16].mxu1 %vm253_vm3, %v729_v16 }
 0xb44   :  { %1739 = vmatprep.subr.bf16.mxu0 %v2025_v1  ;;  %1748 = vmatpush3.bf16.msra.mxu1 %v2112_v3 }
 0xb45   :  { %1751 = vmatprep.mubr.msk.bf16.mxu1 %vm2026_vm0, %v2025_v1  ;;  %1749 = vmatprep.subr.bf16.mxu1 %v2025_v1 }
 0xb47   :  { %1740 = vmatpush3.bf16.msra.mxu0 %v2164_v33 }
 0xb48   :  { %1741 = vmatprep.subr.bf16.mxu0 %v2025_v1  ;;  %1750 = vmatpush3.bf16.msra.mxu1 %v2121_v7 }
 0xb49   :  { %1755 = vmatprep.subr.bf16.mxu1 %v2025_v1 }
 0xb4b   :  { %1742 = vmatpush3.bf16.msra.mxu0 %v2173_v35 }
 0xb4c   :  { %1767 = vmatprep.subr.bf16.mxu0 %v2025_v1 }
 0xc11   :  { %v839_v17 = vpop.f32.mrb[16].mxu0 }
 0xc12   :  { %v845_v18 = vadd.f32 %v839_v17, %v2140_v14  ;;  %v1733_v19 = vpop.f32.mrb[17].mxu0 }
 0xc13   :  { %v842_v20 = vpop.f32.mrb[18].mxu0 }
 0xc14   :  { %1896 = vtanh.f32 %v845_v18  ;;  %v1734_v21 = vpop.f32.mrb[19].mxu0  ;;  %v1552_v29 = vmul.f32 -1.442695, %v845_v18 }
 0xc16   :  { %v767_v22 = vpop.f32.mrb[16].mxu1 }
 0xc17   :  { %v768_v23 = vadd.f32 %v2201_v43, %v767_v22  ;;  %v1725_v24 = vpop.f32.mrb[17].mxu1 }
 0xc18   :  { %v770_v25 = vpop.f32.mrb[18].mxu1 }
 0xc19   :  { %1898 = vtanh.f32 %v768_v23  ;;  %v1726_v26 = vpop.f32.mrb[19].mxu1  ;;  %v1550_v30 = vmul.f32 -1.442695, %v768_v23 }
 0xc1a   :  { %1900 = vpow2.f32 %v1552_v29 }
 0xc1b   :  { %1902 = vpow2.f32 %v1550_v30 }
 0xc1e   :  { %v1897_v27 = vpop.eup %1896 }
 0xc1f   :  { %858 = vrot.lane.b32.xlu1 %v1897_v27, %s2022_s16 }
 0xc23   :  { %v1899_v28 = vpop.eup %1898 }
 0xc24   :  { %782 = vrot.lane.b32.xlu0 %v1899_v28, %s2022_s16  ;;  %v1901_v34 = vpop.eup %1900 }
 0xc25   :  { %v849_v36 = vadd.f32 1.0, %v1901_v34  ;;  %v1903_v37 = vpop.eup %1902 }
 0xc26   :  { %v776_v38 = vadd.f32 1.0, %v1903_v37 }
 0xc27   :  { %1904 = vrcp.f32 %v849_v36 }
 0xc28   :  { %1906 = vrcp.f32 %v776_v38 }
 0xc31   :  { %v1905_v39 = vpop.eup %1904 }
 0xc32   :  { %v1907_v42 = vpop.eup %1906  ;;  %v856_v46 = vmul.f32 %v1905_v39, %v854_v45 }
 0xc33   :  { %v780_v49 = vmul.f32 %v1907_v42, %v2289_v60 }
 0xc91   :  { %v859_v40 = vpop.permute.xlu1 %858 }
 0xc92   :  { %v861_v41 = vmul.f32 %v1905_v39, %v859_v40 }
 0xc94   :  { %863 = vrot.lane.b32.xlu1 %v861_v41, %s2028_s3 }
 0xc96   :  { %v783_v44 = vpop.permute.xlu0 %782 }
 0xc97   :  { %v785_v12 = vmul.f32 %v1907_v42, %v783_v44 }
 0xc99   :  { %787 = vrot.lane.b32.xlu0 %v785_v12, %s2028_s3 }
 0xd06   :  { %v864_v47 = vpop.permute.xlu1 %863 }
 0xd07   :  { %v2323_v48 = vadd.f32 %v864_v47, %v856_v46 }
 0xd09   :  { %1908 = vtanh.f32 %v2323_v48  ;;  %v1009_v30 = vrot.slane %v2323_v48, 6 }
 0xd0b   :  { %v788_v50 = vpop.permute.xlu0 %787 }
 0xd0c   :  { %v2327_v51 = vadd.f32 %v788_v50, %v780_v49 }
 0xd0e   :  { %1910 = vtanh.f32 %v2327_v51 }
 0xd13   :  { %v1909_v52 = vpop.eup %1908 }
 0xd14   :  { %869 = vrot.lane.b32.xlu1 %v1909_v52, %s2022_s16 }
 0xd18   :  { %v1911_v53 = vpop.eup %1910 }
 0xd19   :  { %793 = vrot.lane.b32.xlu0 %v1911_v53, %s2022_s16 }
 0xd86   :  { %v870_v54 = vpop.permute.xlu1 %869 }
 0xd87   :  { %v872_v55 = vmul.f32 %v1905_v39, %v870_v54 }
 0xd89   :  { %874 = vrot.lane.b32.xlu0 %v872_v55, %s2028_s3  ;;  %v950_v56 = vpack.c.bf16 %v872_v55, %v872_v55 }
 0xd8b   :  { %v794_v57 = vpop.permute.xlu0 %793 }
 0xd8c   :  { %v796_v58 = vmul.f32 %v1907_v42, %v794_v57 }
 0xd8d   :  { %952 = vrot.lane.b32.xlu0 %v950_v56, %s2028_s3 }
 0xd8e   :  { %878 = vrot.lane.b32.xlu1 %v796_v58, %s2022_s16 }
 0xdfb   :  { %v875_v59 = vpop.permute.xlu0 %874 }
 0xdff   :  { %v953_v60 = vpop.permute.xlu0 %952 }
 0xe00   :  { %1752 = vmatmul.mubr.msk.bf16.vlgmr.msra.gmra.mrb[20].mxu1 %vm154_vm2, %v953_v60  ;;  %v879_v61 = vpop.permute.xlu1 %878 }
 0xe01   :  { %1756 = vmatpush3.bf16.msra.mxu1 %v2151_v31  ;;  %1763 = vmatprep.mubr.msk.bf16.mxu1 %vm2026_vm0, %v2025_v1  ;;  %v881_v62 = vsel %vm154_vm2, %v875_v59, %v879_v61 }
 0xe02   :  { %1757 = vmatprep.subr.bf16.mxu1 %v2025_v1  ;;  %v882_v63 = vpack.c.bf16 %v881_v62, %v881_v62 }
 0xe04   :  { %1744 = vmatmul.mubr.msk.bf16.vlgmr.msra.gmra.mrb[20].mxu0 %vm253_vm3, %v882_v63 }
 0xe05   :  { %1758 = vmatpush3.bf16.msra.mxu1 %v2157_v32  ;;  %1768 = vmatpush3.bf16.msra.mxu0 %v2112_v3 }
 0xe06   :  { %1759 = vmatprep.subr.bf16.mxu1 %v2025_v1  ;;  %1769 = vmatprep.subr.bf16.mxu0 %v2025_v1 }
 0xe07   :  { %1771 = vmatprep.mubr.msk.bf16.mxu0 %vm2026_vm0, %v2025_v1 }
 0xe09   :  { %1760 = vmatpush3.bf16.msra.mxu1 %v2164_v33  ;;  %1770 = vmatpush3.bf16.msra.mxu0 %v2121_v7 }
 0xe0a   :  { %1761 = vmatprep.subr.bf16.mxu1 %v2025_v1  ;;  %1775 = vmatprep.subr.bf16.mxu0 %v2025_v1 }
 0xe0d   :  { %1762 = vmatpush3.bf16.msra.mxu1 %v2173_v35 }
 0xe0e   :  { %1787 = vmatprep.subr.bf16.mxu1 %v2025_v1 }
 0xed3   :  { %v991_v0 = vpop.f32.mrb[20].mxu1 }
 0xed4   :  { %v998_v2 = vrot.slane %v991_v0, 6  ;;  %v1753_v4 = vpop.f32.mrb[21].mxu1 }
 0xed5   :  { %v994_v5 = vpop.f32.mrb[22].mxu1 }
 0xed6   :  { %v1000_v6 = vadd.f32 %v998_v2, %v2140_v14  ;;  %v1754_v8 = vpop.f32.mrb[23].mxu1 }
 0xed7   :  { %v920_v9 = vpop.f32.mrb[20].mxu0 }
 0xed8   :  { %1912 = vtanh.f32 %v1000_v6  ;;  %v921_v10 = vadd.f32 %v2201_v43, %v920_v9  ;;  %v1745_v11 = vpop.f32.mrb[21].mxu0  ;;  %v1556_v18 = vmul.f32 -1.442695, %v1000_v6 }
 0xed9   :  { %v923_v15 = vpop.f32.mrb[22].mxu0 }
 0xeda   :  { %1914 = vtanh.f32 %v921_v10  ;;  %v1746_v13 = vpop.f32.mrb[23].mxu0  ;;  %v1554_v19 = vmul.f32 -1.442695, %v921_v10 }
 0xedb   :  { %1916 = vpow2.f32 %v1556_v18 }
 0xedc   :  { %1918 = vpow2.f32 %v1554_v19 }
 0xee2   :  { %v1913_v16 = vpop.eup %1912 }
 0xee3   :  { %1013 = vrot.lane.b32.xlu0 %v1913_v16, %s2022_s16 }
 0xee4   :  { %v1915_v17 = vpop.eup %1914 }
 0xee5   :  { %935 = vrot.lane.b32.xlu1 %v1915_v17, %s2022_s16  ;;  %v1917_v20 = vpop.eup %1916 }
 0xee6   :  { %v1919_v21 = vpop.eup %1918  ;;  %v1004_v22 = vadd.f32 1.0, %v1917_v20 }
 0xee7   :  { %v929_v23 = vadd.f32 1.0, %v1919_v21 }
 0xee8   :  { %1920 = vrcp.f32 %v1004_v22 }
 0xee9   :  { %1922 = vrcp.f32 %v929_v23 }
 0xef2   :  { %v1921_v24 = vpop.eup %1920 }
 0xef3   :  { %v1923_v27 = vpop.eup %1922  ;;  %v1011_v34 = vmul.f32 %v1921_v24, %v1009_v30 }
 0xef4   :  { %v933_v38 = vmul.f32 %v1923_v27, %v2327_v51 }
 0xf55   :  { %v1014_v25 = vpop.permute.xlu0 %1013 }
 0xf56   :  { %v1016_v26 = vmul.f32 %v1921_v24, %v1014_v25 }
 0xf57   :  { %v936_v28 = vpop.permute.xlu1 %935 }
 0xf58   :  { %1018 = vrot.lane.b32.xlu0 %v1016_v26, %s2028_s3  ;;  %v938_v29 = vmul.f32 %v1923_v27, %v936_v28 }
 0xf5a   :  { %940 = vrot.lane.b32.xlu1 %v938_v29, %s2028_s3 }
 0xfca   :  { %v1019_v36 = vpop.permute.xlu0 %1018 }
 0xfcb   :  { %v2361_v37 = vadd.f32 %v1019_v36, %v1011_v34 }
 0xfcc   :  { %v941_v39 = vpop.permute.xlu1 %940 }
 0xfcd   :  { %1924 = vtanh.f32 %v2361_v37  ;;  %v2365_v40 = vadd.f32 %v941_v39, %v933_v38  ;;  %v1168_v20 = vrot.slane %v2361_v37, 6 }
 0xfcf   :  { %1926 = vtanh.f32 %v2365_v40 }
 0xfd7   :  { %v1925_v41 = vpop.eup %1924 }
 0xfd8   :  { %1024 = vrot.lane.b32.xlu0 %v1925_v41, %s2022_s16 }
 0xfd9   :  { %v1927_v42 = vpop.eup %1926 }
 0xfda   :  { %946 = vrot.lane.b32.xlu1 %v1927_v42, %s2022_s16 }
0x104a   :  { %v1025_v44 = vpop.permute.xlu0 %1024 }
0x104b   :  { %v1027_v12 = vmul.f32 %v1921_v24, %v1025_v44 }
0x104c   :  { %v947_v46 = vpop.permute.xlu1 %946 }
0x104d   :  { %v1108_v45 = vpack.c.bf16 %v1027_v12, %v1027_v12  ;;  %1029 = vrot.lane.b32.xlu1 %v1027_v12, %s2028_s3  ;;  %v949_v47 = vmul.f32 %v1923_v27, %v947_v46 }
0x104f   :  { %v1110_v48 = vrot.slane %v1108_v45, 1  ;;  %v1033_v49 = vrot.slane %v949_v47, 6 }
0x1051   :  { %1111 = vrot.lane.b32.xlu1 %v1110_v48, %s2028_s3  ;;  %1034 = vrot.lane.b32.xlu0 %v1033_v49, %s2022_s16 }
0x10bf   :  { %v1030_v50 = vpop.permute.xlu1 %1029 }
0x10c3   :  { %v1112_v51 = vpop.permute.xlu1 %1111  ;;  %v1035_v52 = vpop.permute.xlu0 %1034 }
0x10c4   :  { %1772 = vmatmul.mubr.msk.bf16.vlgmr.msra.gmra.mrb[24].mxu0 %vm154_vm2, %v1112_v51  ;;  %v1037_v53 = vsel %vm154_vm2, %v1030_v50, %v1035_v52 }
0x10c5   :  { %1776 = vmatpush3.bf16.msra.mxu0 %v2151_v31  ;;  %1783 = vmatprep.mubr.msk.bf16.mxu0 %vm2026_vm0, %v2025_v1  ;;  %v1038_v54 = vpack.c.bf16 %v1037_v53, %v1037_v53 }
0x10c6   :  { %1777 = vmatprep.subr.bf16.mxu0 %v2025_v1 }
0x10c7   :  { %v1040_v55 = vrot.slane %v1038_v54, 1 }
0x10c9   :  { %1778 = vmatpush3.bf16.msra.mxu0 %v2157_v32  ;;  %1764 = vmatmul.mubr.msk.bf16.vlgmr.msra.gmra.mrb[24].mxu1 %vm253_vm3, %v1040_v55 }
0x10ca   :  { %1779 = vmatprep.subr.bf16.mxu0 %v2025_v1  ;;  %1788 = vmatpush3.bf16.msra.mxu1 %v2112_v3 }
0x10cb   :  { %1791 = vmatprep.mubr.msk.bf16.mxu1 %vm2026_vm0, %v2025_v1  ;;  %1789 = vmatprep.subr.bf16.mxu1 %v2025_v1 }
0x10cd   :  { %1780 = vmatpush3.bf16.msra.mxu0 %v2164_v33 }
0x10ce   :  { %1781 = vmatprep.subr.bf16.mxu0 %v2025_v1  ;;  %1790 = vmatpush3.bf16.msra.mxu1 %v2121_v7 }
0x10cf   :  { %1795 = vmatprep.subr.bf16.mxu1 %v2025_v1 }
0x10d1   :  { %1782 = vmatpush3.bf16.msra.mxu0 %v2173_v35 }
0x1197   :  { %v1150_v56 = vpop.f32.mrb[24].mxu0 }
0x1198   :  { %v1157_v57 = vrot.slane %v1150_v56, 4  ;;  %v1773_v58 = vpop.f32.mrb[25].mxu0 }
0x1199   :  { %v1153_v59 = vpop.f32.mrb[26].mxu0 }
0x119a   :  { %v1159_v3 = vadd.f32 %v1157_v57, %v2140_v14  ;;  %v1774_v60 = vpop.f32.mrb[27].mxu0 }
0x119c   :  { %1928 = vtanh.f32 %v1159_v3  ;;  %v1078_v61 = vpop.f32.mrb[24].mxu1  ;;  %v1560_v5 = vmul.f32 -1.442695, %v1159_v3 }
0x119d   :  { %v1079_v62 = vadd.f32 %v2201_v43, %v1078_v61  ;;  %v1765_v63 = vpop.f32.mrb[25].mxu1 }
0x119e   :  { %v1081_v0 = vpop.f32.mrb[26].mxu1 }
0x119f   :  { %1930 = vtanh.f32 %v1079_v62  ;;  %v1766_v2 = vpop.f32.mrb[27].mxu1  ;;  %v1558_v6 = vmul.f32 -1.442695, %v1079_v62 }
0x11a0   :  { %1932 = vpow2.f32 %v1560_v5 }
0x11a1   :  { %1934 = vpow2.f32 %v1558_v6 }
0x11a6   :  { %v1929_v7 = vpop.eup %1928 }
0x11a7   :  { %1172 = vrot.lane.b32.xlu1 %v1929_v7, %s2022_s16 }
0x11a9   :  { %v1931_v4 = vpop.eup %1930 }
0x11aa   :  { %1093 = vrot.lane.b32.xlu0 %v1931_v4, %s2022_s16  ;;  %v1933_v8 = vpop.eup %1932 }
0x11ab   :  { %v1163_v9 = vadd.f32 1.0, %v1933_v8  ;;  %v1935_v10 = vpop.eup %1934 }
0x11ac   :  { %v1087_v11 = vadd.f32 1.0, %v1935_v10 }
0x11ad   :  { %1936 = vrcp.f32 %v1163_v9 }
0x11ae   :  { %1938 = vrcp.f32 %v1087_v11 }
0x11b7   :  { %v1937_v15 = vpop.eup %1936 }
0x11b8   :  { %v1939_v17 = vpop.eup %1938  ;;  %v1170_v21 = vmul.f32 %v1937_v15, %v1168_v20 }
0x11b9   :  { %v1091_v24 = vmul.f32 %v1939_v17, %v2365_v40 }
0x1219   :  { %v1173_v13 = vpop.permute.xlu1 %1172 }
0x121a   :  { %v1175_v16 = vmul.f32 %v1937_v15, %v1173_v13 }
0x121c   :  { %1177 = vrot.lane.b32.xlu1 %v1175_v16, %s2028_s3  ;;  %v1094_v18 = vpop.permute.xlu0 %1093 }
0x121d   :  { %v1096_v19 = vmul.f32 %v1939_v17, %v1094_v18 }
0x121f   :  { %1098 = vrot.lane.b32.xlu0 %v1096_v19, %s2028_s3 }
0x128e   :  { %v1178_v22 = vpop.permute.xlu1 %1177 }
0x128f   :  { %v2398_v23 = vadd.f32 %v1178_v22, %v1170_v21 }
0x1291   :  { %1940 = vtanh.f32 %v2398_v23  ;;  %v1099_v25 = vpop.permute.xlu0 %1098  ;;  %v1327_v63 = vrot.slane %v2398_v23, 6  ;;  %v1972_v23 = vld [vmem:[%s2466_s5] ss:$0 sm:$0xff] }
0x1292   :  { %v2402_v26 = vadd.f32 %v1099_v25, %v1091_v24 }
0x1294   :  { %1942 = vtanh.f32 %v2402_v26 }
0x129b   :  { %v1941_v27 = vpop.eup %1940 }
0x129c   :  { %1183 = vrot.lane.b32.xlu1 %v1941_v27, %s2022_s16 }
0x129e   :  { %v1943_v28 = vpop.eup %1942 }
0x129f   :  { %1104 = vrot.lane.b32.xlu0 %v1943_v28, %s2022_s16 }
0x130e   :  { %v1184_v29 = vpop.permute.xlu1 %1183 }
0x130f   :  { %v1186_v30 = vmul.f32 %v1937_v15, %v1184_v29 }
0x1311   :  { %v1267_v34 = vpack.c.bf16 %v1186_v30, %v1186_v30  ;;  %1188 = vrot.lane.b32.xlu0 %v1186_v30, %s2028_s3  ;;  %v1105_v36 = vpop.permute.xlu0 %1104 }
0x1312   :  { %v1107_v38 = vmul.f32 %v1939_v17, %v1105_v36 }
0x1313   :  { %v1269_v37 = vrot.slane %v1267_v34, 2 }
0x1314   :  { %v1192_v39 = vrot.slane %v1107_v38, 4 }
0x1315   :  { %1270 = vrot.lane.b32.xlu0 %v1269_v37, %s2028_s3 }
0x1316   :  { %1193 = vrot.lane.b32.xlu1 %v1192_v39, %s2022_s16 }
0x1383   :  { %v1189_v40 = vpop.permute.xlu0 %1188 }
0x1387   :  { %v1271_v41 = vpop.permute.xlu0 %1270 }
0x1388   :  { %1792 = vmatmul.mubr.msk.bf16.vlgmr.msra.gmra.mrb[28].mxu1 %vm154_vm2, %v1271_v41  ;;  %v1194_v42 = vpop.permute.xlu1 %1193 }
0x1389   :  { %1796 = vmatpush3.bf16.msra.mxu1 %v2151_v31  ;;  %1803 = vmatprep.mubr.msk.bf16.mxu1 %vm2026_vm0, %v2025_v1  ;;  %v1196_v44 = vsel %vm154_vm2, %v1189_v40, %v1194_v42  ;;  %v1426_v42 = vld [vmem:[%s2467_s6] sm:$0xff] }
0x138a   :  { %1797 = vmatprep.subr.bf16.mxu1 %v2025_v1  ;;  %v1197_v12 = vpack.c.bf16 %v1196_v44, %v1196_v44  ;;  %v1427_v44 = vld [vmem:[%s2467_s6 + $0x8] sm:$0xff] }
0x138c   :  { %v1199_v45 = vrot.slane %v1197_v12, 2  ;;  %v1428_v12 = vld [vmem:[%s2467_s6 + $0x10] sm:$0xff] }
0x138d   :  { %1798 = vmatpush3.bf16.msra.mxu1 %v2157_v32 }
0x138e   :  { %1799 = vmatprep.subr.bf16.mxu1 %v2025_v1  ;;  %1784 = vmatmul.mubr.msk.bf16.vlgmr.msra.gmra.mrb[28].mxu0 %vm253_vm3, %v1199_v45  ;;  %v2029_v45 = vmov 0.0|0.0  }
0x138f   :  { %1815 = vmatprep.mubr.msk.f32.mxu0 %vm2026_vm0, %v2025_v1  ;;  %1818 = vmatprep.subr.bf16.mxu0 %v2029_v45 }
0x1391   :  { %1800 = vmatpush3.bf16.msra.mxu1 %v2164_v33 }
0x1392   :  { %1801 = vmatprep.subr.bf16.mxu1 %v2025_v1 }
0x1395   :  { %1802 = vmatpush3.bf16.msra.mxu1 %v2173_v35 }
0x145b   :  { %v1309_v31 = vpop.f32.mrb[28].mxu1 }
0x145c   :  { %v1316_v46 = vrot.slane %v1309_v31, 2  ;;  %v1793_v47 = vpop.f32.mrb[29].mxu1  ;;  %v1819_v31 = vpack.c.bf16 %v1427_v44, %v1426_v42 }
0x145d   :  { %v1312_v48 = vpop.f32.mrb[30].mxu1 }
0x145e   :  { %v1318_v49 = vadd.f32 %v1316_v46, %v2140_v14  ;;  %v1794_v32 = vpop.f32.mrb[31].mxu1  ;;  %v1429_v46 = vld [vmem:[%s2467_s6 + $0x18] sm:$0xff]  ;;  %1820 = vmatpush3.bf16.msra.mxu0 %v1819_v31 }
0x145f   :  { %v1822_v47 = vpack.c.bf16 %v1429_v46, %v1428_v12  ;;  %1821 = vmatprep.subr.bf16.mxu0 %v2029_v45 }
0x1460   :  { %1944 = vtanh.f32 %v1318_v49  ;;  %v1564_v35 = vmul.f32 -1.442695, %v1318_v49 }
0x1461   :  { %v1237_v50 = vpop.f32.mrb[28].mxu0 }
0x1462   :  { %v1238_v51 = vadd.f32 %v2201_v43, %v1237_v50  ;;  %v1785_v52 = vpop.f32.mrb[29].mxu0  ;;  %1823 = vmatpush3.bf16.msra.mxu0 %v1822_v47 }
0x1463   :  { %v1240_v53 = vpop.f32.mrb[30].mxu0 }
0x1464   :  { %1946 = vtanh.f32 %v1238_v51  ;;  %v1786_v54 = vpop.f32.mrb[31].mxu0  ;;  %v1562_v55 = vmul.f32 -1.442695, %v1238_v51  ;;  %v1567_v51 = vld [vmem:[#allocation2] ss:$0 sm:$0xff] }
0x1465   :  { %1948 = vpow2.f32 %v1564_v35 }
0x1466   :  { %1950 = vpow2.f32 %v1562_v55 }
0x146a   :  { %v1945_v33 = vpop.eup %1944 }
0x146b   :  { %1331 = vrot.lane.b32.xlu0 %v1945_v33, %s2022_s16 }
0x146e   :  { %v1947_v1 = vpop.eup %1946 }
0x146f   :  { %1252 = vrot.lane.b32.xlu1 %v1947_v1, %s2022_s16  ;;  %v1949_v14 = vpop.eup %1948 }
0x1470   :  { %v1322_v56 = vadd.f32 1.0, %v1949_v14  ;;  %v1951_v57 = vpop.eup %1950 }
0x1471   :  { %v1246_v58 = vadd.f32 1.0, %v1951_v57 }
0x1472   :  { %1952 = vrcp.f32 %v1322_v56 }
0x1473   :  { %1954 = vrcp.f32 %v1246_v58 }
0x147c   :  { %v1953_v43 = vpop.eup %1952 }
0x147d   :  { %v1955_v60 = vpop.eup %1954  ;;  %v1329_v0 = vmul.f32 %v1953_v43, %v1327_v63 }
0x147e   :  { %v1250_v4 = vmul.f32 %v1955_v60, %v2402_v26 }
0x14dd   :  { %v1332_v59 = vpop.permute.xlu0 %1331 }
0x14de   :  { %v1334_v3 = vmul.f32 %v1953_v43, %v1332_v59 }
0x14e0   :  { %1336 = vrot.lane.b32.xlu0 %v1334_v3, %s2028_s3 }
0x14e1   :  { %v1253_v61 = vpop.permute.xlu1 %1252 }
0x14e2   :  { %v1255_v62 = vmul.f32 %v1955_v60, %v1253_v61 }
0x14e4   :  { %1257 = vrot.lane.b32.xlu1 %v1255_v62, %s2028_s3 }
0x1552   :  { %v1337_v2 = vpop.permute.xlu0 %1336 }
0x1553   :  { %v1339_v7 = vadd.f32 %v1337_v2, %v1329_v0 }
0x1555   :  { %1956 = vtanh.f32 %v1339_v7 }
0x1556   :  { %v1258_v5 = vpop.permute.xlu1 %1257 }
0x1557   :  { %v1260_v6 = vadd.f32 %v1258_v5, %v1250_v4 }
0x1559   :  { %1958 = vtanh.f32 %v1260_v6 }
0x155f   :  { %v1957_v8 = vpop.eup %1956 }
0x1560   :  { %1342 = vrot.lane.b32.xlu0 %v1957_v8, %s2022_s16 }
0x1563   :  { %v1959_v9 = vpop.eup %1958 }
0x1564   :  { %1263 = vrot.lane.b32.xlu1 %v1959_v9, %s2022_s16 }
0x15d2   :  { %v1343_v10 = vpop.permute.xlu0 %1342 }
0x15d3   :  { %v1345_v11 = vmul.f32 %v1953_v43, %v1343_v10 }
0x15d5   :  { %1347 = vrot.lane.b32.xlu1 %v1345_v11, %s2028_s3 }
0x15d6   :  { %v1264_v15 = vpop.permute.xlu1 %1263 }
0x15d7   :  { %v1266_v13 = vmul.f32 %v1955_v60, %v1264_v15 }
0x15d9   :  { %v1351_v16 = vrot.slane %v1266_v13, 2 }
0x15db   :  { %1352 = vrot.lane.b32.xlu0 %v1351_v16, %s2022_s16 }
0x1647   :  { %v1348_v17 = vpop.permute.xlu1 %1347 }
0x164d   :  { %v1353_v18 = vpop.permute.xlu0 %1352 }
0x164e   :  { %v1355_v19 = vsel %vm154_vm2, %v1348_v17, %v1353_v18 }
0x164f   :  { %v1356_v20 = vpack.c.bf16 %v1355_v19, %v1355_v19 }
0x1651   :  { %v1358_v21 = vrot.slane %v1356_v20, 3 }
0x1653   :  { %1804 = vmatmul.mubr.msk.bf16.vlgmr.msra.gmra.mrb[32].mxu1 %vm253_vm3, %v1358_v21 }
0x1726   :  { %v1396_v22 = vpop.f32.mrb[32].mxu1 }
0x1727   :  { %v1397_v24 = vadd.f32 %v1972_v23, %v1396_v22  ;;  %v1805_v25 = vpop.f32.mrb[33].mxu1 }
0x1728   :  { %v1399_v26 = vpop.f32.mrb[34].mxu1 }
0x1729   :  { %1960 = vtanh.f32 %v1397_v24  ;;  %v1806_v27 = vpop.f32.mrb[35].mxu1  ;;  %v1566_v29 = vmul.f32 -1.442695, %v1397_v24 }
0x172b   :  { %1962 = vpow2.f32 %v1566_v29 }
0x1733   :  { %v1961_v28 = vpop.eup %1960 }
0x1734   :  { %1411 = vrot.lane.b32.xlu1 %v1961_v28, %s2022_s16 }
0x1735   :  { %v1963_v30 = vpop.eup %1962 }
0x1736   :  { %v1405_v34 = vadd.f32 1.0, %v1963_v30 }
0x1738   :  { %1964 = vrcp.f32 %v1405_v34 }
0x1742   :  { %v1965_v36 = vpop.eup %1964 }
0x1743   :  { %v1409_v39 = vmul.f32 %v1965_v36, %v1260_v6 }
0x17a6   :  { %v1412_v37 = vpop.permute.xlu1 %1411 }
0x17a7   :  { %v1414_v38 = vmul.f32 %v1965_v36, %v1412_v37 }
0x17a9   :  { %1416 = vrot.lane.b32.xlu0 %v1414_v38, %s2028_s3 }
0x181b   :  { %v1417_v40 = vpop.permute.xlu0 %1416 }
0x181c   :  { %v1419_v41 = vadd.f32 %v1417_v40, %v1409_v39 }
0x181e   :  { %1966 = vtanh.f32 %v1419_v41 }
0x1828   :  { %v1967_v48 = vpop.eup %1966 }
0x1829   :  { %1422 = vrot.lane.b32.xlu1 %v1967_v48, %s2022_s16 }
0x189b   :  { %v1423_v49 = vpop.permute.xlu1 %1422 }
0x189c   :  { %v1425_v32 = vmul.f32 %v1965_v36, %v1423_v49 }
0x189e   :  { %1438 = vrot.lane.b32.xlu0 %v1425_v32, %s2028_s3 }
0x1910   :  { %v1439_v50 = vpop.permute.xlu0 %1438 }
0x1911   :  { %1816 = vmatmul.mubr.msk.f32.vlgmr.msra.gmra.mrb[32].mxu0 %vm154_vm2, %v1439_v50 }
0x19e4   :  { %v1508_v52 = vpop.f32.mrb[32].mxu0 }
0x19e5   :  { %v1509_v53 = vadd.f32 %v1567_v51, %v1508_v52  ;;  %v1817_v54 = vpop.f32.mrb[33].mxu0 }
0x19e7   :  { %v1569_v33 = vmul.f32 -1.442695, %v1509_v53 }
0x19e9   :  { %1968 = vpow2.f32 %v1569_v33 }
0x19f3   :  { %v1969_v1 = vpop.eup %1968 }
0x19f4   :  { %v1515_v35 = vadd.f32 1.0, %v1969_v1 }
0x19f6   :  { %1970 = vrcp.f32 %v1515_v35 }
0x1a00   :  { %v1971_v55 = vpop.eup %1970 }
0x1a01   :  { %1519 = vst.msk [vmem:[%s2469_s8] sm:$0x3] %vm1518_vm4, %v1971_v55 }
0x1a02   :  { %1524 = vsyncpa [#allocation4], 1 }
0x1a03   :  { %1525 = vsyncpa [#allocation6], 1 }

</bundles_post_ra>
